<compile_context>
chip_gen: v7x
topology: tpu7x:2x2x1
jax: 0.10.0
libtpu: 0.0.40
codegen_flags: <defaults>
</compile_context>

<pallas_src>
import numpy as np

import jax
import jax.numpy as jnp
from jax.experimental import pallas as pl
from jax.experimental.pallas import tpu as pltpu


def fused_tconv_kernel(x_ref, a1_ref, b1_ref, a2_ref, b2_ref, o_ref,
                       acc1_ref, acc2_ref):
    """ConvTranspose2d(KxK) -> ReLU -> ConvTranspose2d(KxK), stride=1, pad=0.

    Packed layout: a spatial row of activations is kept lane-packed as
    j = channel*width + column ("channel-major"), so the kw shift of the
    transposed conv is pre-folded into the block-Toeplitz weights and only the
    K row (kh) shifts remain in the kernel.

    x_ref   : (NB, Cin, H, W)       f32  NCHW input block
    a1_ref  : (K*Cin, W, C1*W1)     f32  layer-1 weights: one (kh, cin) slab per
                                         leading index, lanes = packed output
    b1_ref  : (1, C1*W1)            f32  layer-1 bias repeated over W1
    a2_ref  : (K, C1*W1, C2*W2)     f32  layer-2 block-Toeplitz weights
    b2_ref  : (1, C2*W2)            f32  layer-2 bias repeated over W2
    o_ref   : (NB, C2, H2, W2)      f32  NCHW output block
    acc1_ref: (NB, H1, C1*W1)       f32  VMEM accumulator, layer 1
    acc2_ref: (NB, H2, C2*W2)       f32  VMEM accumulator, layer 2
    """
    nb, cin, h, w = x_ref.shape
    k = a2_ref.shape[0]
    p = k - 1
    h1 = h + p
    h2 = h1 + p
    w2 = w + 2 * p
    l1 = b1_ref.shape[1]                 # C1 * W1
    l2 = b2_ref.shape[1]                 # C2 * W2
    c2 = l2 // w2

    x = x_ref[...]                       # stays in its native NCHW vreg layout

    # ---------------- layer 1 -----------------------------------------------
    # acc1[n, p, d*W1 + q] = b1[d] + sum_kh Y_kh[n, p - kh, d*W1 + q]
    # Y_kh[n, hi, :]      = sum_c x[n, c, hi, :] @ A1[kh, c]   (kw folded in A1)
    acc1_ref[...] = jnp.broadcast_to(b1_ref[...].reshape(1, 1, l1),
                                     acc1_ref.shape)
    for kh in range(k):
        y = jnp.zeros((nb * h, l1), jnp.float32)
        for c in range(cin):
            y = y + jnp.dot(x[:, c].reshape(nb * h, w),
                            a1_ref[kh * cin + c],
                            preferred_element_type=jnp.float32)
        acc1_ref[:, kh:kh + h, :] += y.reshape(nb, h, l1)
    act1 = jnp.maximum(acc1_ref[...], 0.0)          # fused ReLU (f32)

    # ---------------- layer 2 -----------------------------------------------
    # Input is already lane-packed (channel-major), so just one dot per kh.
    x2 = act1.reshape(nb * h1, l1)
    acc2_ref[...] = jnp.broadcast_to(b2_ref[...].reshape(1, 1, l2),
                                     acc2_ref.shape)
    for kh in range(k):
        y = jnp.dot(x2, a2_ref[kh], preferred_element_type=jnp.float32)
        acc2_ref[:, kh:kh + h1, :] += y.reshape(nb, h1, l2)

    # ---------------- unpack to NCHW (no wrapper transpose dispatch) ---------
    for d in range(c2):
        o_ref[:, d, :, :] = acc2_ref[:, :, d * w2:(d + 1) * w2]


def fused_transposed_conv(x_nchw, a1, b1p, a2, b2p):
    n, cin, h, w = x_nchw.shape
    k = a2.shape[0]
    p = k - 1
    h1 = h + p
    h2 = h1 + p
    w2 = w + 2 * p
    l1 = b1p.shape[1]
    l2 = b2p.shape[1]
    c2 = l2 // w2

    return pl.pallas_call(
        fused_tconv_kernel,
        out_shape=jax.ShapeDtypeStruct((n, c2, h2, w2), jnp.float32),
        grid=(n,),
        in_specs=[
            pl.BlockSpec((1, cin, h, w), lambda i: (i, 0, 0, 0)),
            pl.BlockSpec(a1.shape, lambda i: (0, 0, 0)),
            pl.BlockSpec(b1p.shape, lambda i: (0, 0)),
            pl.BlockSpec(a2.shape, lambda i: (0, 0, 0)),
            pl.BlockSpec(b2p.shape, lambda i: (0, 0)),
        ],
        out_specs=pl.BlockSpec((1, c2, h2, w2), lambda i: (i, 0, 0, 0)),
        scratch_shapes=[
            pltpu.VMEM((1, h1, l1), jnp.float32),
            pltpu.VMEM((1, h2, l2), jnp.float32),
        ],
        compiler_params=pltpu.CompilerParams(
            dimension_semantics=("parallel",)),   # v7x: shard batch over 2 TCs
    )(x_nchw, a1, b1p, a2, b2p)


@jax.jit
def transposed_conv_model(x_nchw, packed):
    """Forward pass matching the PyTorch module (NCHW in, NCHW out)."""
    return fused_transposed_conv(x_nchw, packed["a1"], packed["b1"],
                                 packed["a2"], packed["b2"])


# ---------------- one-time host-side weight packing --------------------------
def _pack_block_toeplitz(w_t, w_in):
    """PyTorch ConvTranspose2d weight (Cin, Cout, K, K) -> (K, Cin*w_in, Cout*w_out)
    channel-major block-Toeplitz:  row = c*w_in + wi,  col = d*w_out + (wi + kw)."""
    w_np = np.asarray(w_t, dtype=np.float32)
    cin, cout, k, _ = w_np.shape
    w_out = w_in + k - 1
    a = np.zeros((k, cin * w_in, cout * w_out), np.float32)
    for kh in range(k):
        for kw in range(k):
            for wi in range(w_in):
                a[kh, wi::w_in, (wi + kw)::w_out] = w_np[:, :, kh, kw]
    return a


def prepare_params(w1_t, b1, w2_t, b2, w_in):
    """Pack weights once for a given input width (kernel is shape-specialized)."""
    k = int(w1_t.shape[2])
    cin = int(w1_t.shape[0])
    w_mid = w_in + k - 1
    w_out = w_mid + k - 1
    a1 = _pack_block_toeplitz(w1_t, w_in)                     # (K, Cin*W, C1*W1)
    # Split layer-1 rows back into (kh, cin) leading slabs so the kernel can
    # keep x in native NCHW layout and sum over cin with K*Cin tiny dots.
    a1 = a1.reshape(k, cin, w_in, -1).reshape(k * cin, w_in, -1)
    return {
        "a1": jnp.asarray(a1),
        "b1": jnp.asarray(np.repeat(np.asarray(b1, np.float32), w_mid)[None, :]),
        "a2": jnp.asarray(_pack_block_toeplitz(w2_t, w_mid)),
        "b2": jnp.asarray(np.repeat(np.asarray(b2, np.float32), w_out)[None, :]),
    }


# ---------------- reference (pure JAX, PyTorch ConvTranspose2d semantics) ----
def _ref_tconv_nchw(x, w_torch, b):
    # x: (N, Cin, H, W); w_torch: (Cin, Cout, K, K); b: (Cout,)
    n, cin, h, w = x.shape
    cout, k = w_torch.shape[1], w_torch.shape[2]
    out = jnp.zeros((n, cout, h + k - 1, w + k - 1), jnp.float32) + b.reshape(1, -1, 1, 1)
    for kh in range(k):
        for kw in range(k):
            contrib = jnp.einsum('nchw,cd->ndhw', x, w_torch[:, :, kh, kw],
                                 precision=jax.lax.Precision.HIGHEST)
            out = out.at[:, :, kh:kh + h, kw:kw + w].add(contrib)
    return out


if __name__ == "__main__":
    key = jax.random.PRNGKey(0)
    k1, k2, k3, k4, kx = jax.random.split(key, 5)

    Cin = Cout = 10
    K = 3
    bound = 1.0 / float((Cin * K * K) ** 0.5)

    # Deterministic synthetic parameters in PyTorch ConvTranspose2d layout.
    w1_t = jax.random.uniform(k1, (Cin, Cout, K, K), jnp.float32, -bound, bound)
    b1 = jax.random.uniform(k2, (Cout,), jnp.float32, -bound, bound)
    w2_t = jax.random.uniform(k3, (Cin, Cout, K, K), jnp.float32, -bound, bound)
    b2 = jax.random.uniform(k4, (Cout,), jnp.float32, -bound, bound)

    # Small input consistent with the module: NCHW with 10 channels.
    x = jax.random.normal(kx, (2, 10, 8, 8), jnp.float32)

    packed = prepare_params(w1_t, b1, w2_t, b2, w_in=x.shape[-1])

    out = transposed_conv_model(x, packed)
    out = jax.block_until_ready(out)

    # Sanity check against a pure-JAX f32 reference of the PyTorch semantics.
    ref = _ref_tconv_nchw(x, w1_t, b1)
    ref = jnp.maximum(ref, 0.0)
    ref = _ref_tconv_nchw(ref, w2_t, b2)
    assert out.shape == (2, 10, 12, 12), out.shape
    # f32 operands throughout (bf16 casts removed); slack only covers the MXU's
    # reduced-precision f32 passes.
    assert jnp.allclose(out, ref, atol=5e-3, rtol=5e-3), "mismatch vs reference"

    print("KERNEL_OK")
</pallas_src>

<mosaic_0001>
module attributes {stable_mosaic.version = 11 : i64} {
  func.func @fused_tconv_kernel(%arg0: i32, %arg1: memref<1x10x8x8xf32, #tpu.memory_space<vmem>>, %arg2: memref<30x8x100xf32, #tpu.memory_space<vmem>>, %arg3: memref<1x100xf32, #tpu.memory_space<vmem>>, %arg4: memref<3x100x120xf32, #tpu.memory_space<vmem>>, %arg5: memref<1x120xf32, #tpu.memory_space<vmem>>, %arg6: memref<1x10x12x12xf32, #tpu.memory_space<vmem>>, %arg7: memref<1x10x100xf32, #tpu.memory_space<vmem>>, %arg8: memref<1x12x120xf32, #tpu.memory_space<vmem>>) attributes {dimension_semantics = [#tpu.dimension_semantics<parallel>], iteration_bounds = array<i64: 2>, scalar_prefetch = 0 : i64, scratch_operands = 2 : i64, tpu.core_type = #tpu.core_type<tc>, window_params = [{transform_indices = @transform_0, window_bounds = array<i64: 1, 10, 8, 8>}, {pipeline_mode = #tpu.pipeline_mode<synchronous>, transform_indices = @transform_1, window_bounds = array<i64: 30, 8, 100>}, {pipeline_mode = #tpu.pipeline_mode<synchronous>, transform_indices = @transform_2, window_bounds = array<i64: 1, 100>}, {pipeline_mode = #tpu.pipeline_mode<synchronous>, transform_indices = @transform_3, window_bounds = array<i64: 3, 100, 120>}, {pipeline_mode = #tpu.pipeline_mode<synchronous>, transform_indices = @transform_4, window_bounds = array<i64: 1, 120>}, {transform_indices = @transform_5, window_bounds = array<i64: 1, 10, 12, 12>}]} {
    %c0 = arith.constant 0 : index
    %c0_0 = arith.constant 0 : index
    %c0_1 = arith.constant 0 : index
    %c0_2 = arith.constant 0 : index
    %0 = vector.load %arg1[%c0, %c0_0, %c0_1, %c0_2] : memref<1x10x8x8xf32, #tpu.memory_space<vmem>>, vector<1x10x8x8xf32>
    %c0_3 = arith.constant 0 : index
    %c0_4 = arith.constant 0 : index
    %1 = vector.load %arg3[%c0_3, %c0_4] : memref<1x100xf32, #tpu.memory_space<vmem>>, vector<1x100xf32>
    %2 = vector.shape_cast %1 : vector<1x100xf32> to vector<1x1x100xf32>
    %3 = vector.shape_cast %2 : vector<1x1x100xf32> to vector<1x1x100xf32>
    %4 = vector.broadcast %3 : vector<1x1x100xf32> to vector<1x10x100xf32>
    %c0_5 = arith.constant 0 : index
    %c0_6 = arith.constant 0 : index
    %c0_7 = arith.constant 0 : index
    %5 = vector.load %arg7[%c0_5, %c0_6, %c0_7] : memref<1x10x100xf32, #tpu.memory_space<vmem>>, vector<1x10x100xf32>
    tpu.vector_store %arg7[%c0_5, %c0_6, %c0_7], %4 {strides = array<i32>} : memref<1x10x100xf32, #tpu.memory_space<vmem>>, vector<1x10x100xf32>,
    %cst = arith.constant 0.000000e+00 : f32
    %6 = vector.broadcast %cst : f32 to vector<8x100xf32>
    %7 = vector.extract_strided_slice %0 {offsets = [0, 0, 0, 0], sizes = [1, 1, 8, 8], strides = [1, 1, 1, 1]} : vector<1x10x8x8xf32> to vector<1x1x8x8xf32>
    %8 = vector.shape_cast %7 : vector<1x1x8x8xf32> to vector<1x8x8xf32>
    %9 = vector.shape_cast %8 : vector<1x8x8xf32> to vector<8x8xf32>
    %c0_8 = arith.constant 0 : index
    %c0_9 = arith.constant 0 : index
    %c0_10 = arith.constant 0 : index
    %10 = vector.load %arg2[%c0_8, %c0_9, %c0_10] : memref<30x8x100xf32, #tpu.memory_space<vmem>>, vector<1x8x100xf32>
    %11 = vector.shape_cast %10 : vector<1x8x100xf32> to vector<8x100xf32>
    %cst_11 = arith.constant dense<0.000000e+00> : vector<8x100xf32>
    %12 = tpu.matmul %9, %11, %cst_11 {dimension_numbers = #tpu.dot_dimension_numbers<[1], [0], [0], [1], [0, 0, 1, 1], [], []>} : vector<8x8xf32>, vector<8x100xf32>, vector<8x100xf32> -> vector<8x100xf32>
    %13 = arith.addf %6, %12 : vector<8x100xf32>
    %14 = vector.extract_strided_slice %0 {offsets = [0, 1, 0, 0], sizes = [1, 1, 8, 8], strides = [1, 1, 1, 1]} : vector<1x10x8x8xf32> to vector<1x1x8x8xf32>
    %15 = vector.shape_cast %14 : vector<1x1x8x8xf32> to vector<1x8x8xf32>
    %16 = vector.shape_cast %15 : vector<1x8x8xf32> to vector<8x8xf32>
    %c1 = arith.constant 1 : index
    %c0_12 = arith.constant 0 : index
    %c0_13 = arith.constant 0 : index
    %17 = vector.load %arg2[%c1, %c0_12, %c0_13] : memref<30x8x100xf32, #tpu.memory_space<vmem>>, vector<1x8x100xf32>
    %18 = vector.shape_cast %17 : vector<1x8x100xf32> to vector<8x100xf32>
    %cst_14 = arith.constant dense<0.000000e+00> : vector<8x100xf32>
    %19 = tpu.matmul %16, %18, %cst_14 {dimension_numbers = #tpu.dot_dimension_numbers<[1], [0], [0], [1], [0, 0, 1, 1], [], []>} : vector<8x8xf32>, vector<8x100xf32>, vector<8x100xf32> -> vector<8x100xf32>
    %20 = arith.addf %13, %19 : vector<8x100xf32>
    %21 = vector.extract_strided_slice %0 {offsets = [0, 2, 0, 0], sizes = [1, 1, 8, 8], strides = [1, 1, 1, 1]} : vector<1x10x8x8xf32> to vector<1x1x8x8xf32>
    %22 = vector.shape_cast %21 : vector<1x1x8x8xf32> to vector<1x8x8xf32>
    %23 = vector.shape_cast %22 : vector<1x8x8xf32> to vector<8x8xf32>
    %c2 = arith.constant 2 : index
    %c0_15 = arith.constant 0 : index
    %c0_16 = arith.constant 0 : index
    %24 = vector.load %arg2[%c2, %c0_15, %c0_16] : memref<30x8x100xf32, #tpu.memory_space<vmem>>, vector<1x8x100xf32>
    %25 = vector.shape_cast %24 : vector<1x8x100xf32> to vector<8x100xf32>
    %cst_17 = arith.constant dense<0.000000e+00> : vector<8x100xf32>
    %26 = tpu.matmul %23, %25, %cst_17 {dimension_numbers = #tpu.dot_dimension_numbers<[1], [0], [0], [1], [0, 0, 1, 1], [], []>} : vector<8x8xf32>, vector<8x100xf32>, vector<8x100xf32> -> vector<8x100xf32>
    %27 = arith.addf %20, %26 : vector<8x100xf32>
    %28 = vector.extract_strided_slice %0 {offsets = [0, 3, 0, 0], sizes = [1, 1, 8, 8], strides = [1, 1, 1, 1]} : vector<1x10x8x8xf32> to vector<1x1x8x8xf32>
    %29 = vector.shape_cast %28 : vector<1x1x8x8xf32> to vector<1x8x8xf32>
    %30 = vector.shape_cast %29 : vector<1x8x8xf32> to vector<8x8xf32>
    %c3 = arith.constant 3 : index
    %c0_18 = arith.constant 0 : index
    %c0_19 = arith.constant 0 : index
    %31 = vector.load %arg2[%c3, %c0_18, %c0_19] : memref<30x8x100xf32, #tpu.memory_space<vmem>>, vector<1x8x100xf32>
    %32 = vector.shape_cast %31 : vector<1x8x100xf32> to vector<8x100xf32>
    %cst_20 = arith.constant dense<0.000000e+00> : vector<8x100xf32>
    %33 = tpu.matmul %30, %32, %cst_20 {dimension_numbers = #tpu.dot_dimension_numbers<[1], [0], [0], [1], [0, 0, 1, 1], [], []>} : vector<8x8xf32>, vector<8x100xf32>, vector<8x100xf32> -> vector<8x100xf32>
    %34 = arith.addf %27, %33 : vector<8x100xf32>
    %35 = vector.extract_strided_slice %0 {offsets = [0, 4, 0, 0], sizes = [1, 1, 8, 8], strides = [1, 1, 1, 1]} : vector<1x10x8x8xf32> to vector<1x1x8x8xf32>
    %36 = vector.shape_cast %35 : vector<1x1x8x8xf32> to vector<1x8x8xf32>
    %37 = vector.shape_cast %36 : vector<1x8x8xf32> to vector<8x8xf32>
    %c4 = arith.constant 4 : index
    %c0_21 = arith.constant 0 : index
    %c0_22 = arith.constant 0 : index
    %38 = vector.load %arg2[%c4, %c0_21, %c0_22] : memref<30x8x100xf32, #tpu.memory_space<vmem>>, vector<1x8x100xf32>
    %39 = vector.shape_cast %38 : vector<1x8x100xf32> to vector<8x100xf32>
    %cst_23 = arith.constant dense<0.000000e+00> : vector<8x100xf32>
    %40 = tpu.matmul %37, %39, %cst_23 {dimension_numbers = #tpu.dot_dimension_numbers<[1], [0], [0], [1], [0, 0, 1, 1], [], []>} : vector<8x8xf32>, vector<8x100xf32>, vector<8x100xf32> -> vector<8x100xf32>
    %41 = arith.addf %34, %40 : vector<8x100xf32>
    %42 = vector.extract_strided_slice %0 {offsets = [0, 5, 0, 0], sizes = [1, 1, 8, 8], strides = [1, 1, 1, 1]} : vector<1x10x8x8xf32> to vector<1x1x8x8xf32>
    %43 = vector.shape_cast %42 : vector<1x1x8x8xf32> to vector<1x8x8xf32>
    %44 = vector.shape_cast %43 : vector<1x8x8xf32> to vector<8x8xf32>
    %c5 = arith.constant 5 : index
    %c0_24 = arith.constant 0 : index
    %c0_25 = arith.constant 0 : index
    %45 = vector.load %arg2[%c5, %c0_24, %c0_25] : memref<30x8x100xf32, #tpu.memory_space<vmem>>, vector<1x8x100xf32>
    %46 = vector.shape_cast %45 : vector<1x8x100xf32> to vector<8x100xf32>
    %cst_26 = arith.constant dense<0.000000e+00> : vector<8x100xf32>
    %47 = tpu.matmul %44, %46, %cst_26 {dimension_numbers = #tpu.dot_dimension_numbers<[1], [0], [0], [1], [0, 0, 1, 1], [], []>} : vector<8x8xf32>, vector<8x100xf32>, vector<8x100xf32> -> vector<8x100xf32>
    %48 = arith.addf %41, %47 : vector<8x100xf32>
    %49 = vector.extract_strided_slice %0 {offsets = [0, 6, 0, 0], sizes = [1, 1, 8, 8], strides = [1, 1, 1, 1]} : vector<1x10x8x8xf32> to vector<1x1x8x8xf32>
    %50 = vector.shape_cast %49 : vector<1x1x8x8xf32> to vector<1x8x8xf32>
    %51 = vector.shape_cast %50 : vector<1x8x8xf32> to vector<8x8xf32>
    %c6 = arith.constant 6 : index
    %c0_27 = arith.constant 0 : index
    %c0_28 = arith.constant 0 : index
    %52 = vector.load %arg2[%c6, %c0_27, %c0_28] : memref<30x8x100xf32, #tpu.memory_space<vmem>>, vector<1x8x100xf32>
    %53 = vector.shape_cast %52 : vector<1x8x100xf32> to vector<8x100xf32>
    %cst_29 = arith.constant dense<0.000000e+00> : vector<8x100xf32>
    %54 = tpu.matmul %51, %53, %cst_29 {dimension_numbers = #tpu.dot_dimension_numbers<[1], [0], [0], [1], [0, 0, 1, 1], [], []>} : vector<8x8xf32>, vector<8x100xf32>, vector<8x100xf32> -> vector<8x100xf32>
    %55 = arith.addf %48, %54 : vector<8x100xf32>
    %56 = vector.extract_strided_slice %0 {offsets = [0, 7, 0, 0], sizes = [1, 1, 8, 8], strides = [1, 1, 1, 1]} : vector<1x10x8x8xf32> to vector<1x1x8x8xf32>
    %57 = vector.shape_cast %56 : vector<1x1x8x8xf32> to vector<1x8x8xf32>
    %58 = vector.shape_cast %57 : vector<1x8x8xf32> to vector<8x8xf32>
    %c7 = arith.constant 7 : index
    %c0_30 = arith.constant 0 : index
    %c0_31 = arith.constant 0 : index
    %59 = vector.load %arg2[%c7, %c0_30, %c0_31] : memref<30x8x100xf32, #tpu.memory_space<vmem>>, vector<1x8x100xf32>
    %60 = vector.shape_cast %59 : vector<1x8x100xf32> to vector<8x100xf32>
    %cst_32 = arith.constant dense<0.000000e+00> : vector<8x100xf32>
    %61 = tpu.matmul %58, %60, %cst_32 {dimension_numbers = #tpu.dot_dimension_numbers<[1], [0], [0], [1], [0, 0, 1, 1], [], []>} : vector<8x8xf32>, vector<8x100xf32>, vector<8x100xf32> -> vector<8x100xf32>
    %62 = arith.addf %55, %61 : vector<8x100xf32>
    %63 = vector.extract_strided_slice %0 {offsets = [0, 8, 0, 0], sizes = [1, 1, 8, 8], strides = [1, 1, 1, 1]} : vector<1x10x8x8xf32> to vector<1x1x8x8xf32>
    %64 = vector.shape_cast %63 : vector<1x1x8x8xf32> to vector<1x8x8xf32>
    %65 = vector.shape_cast %64 : vector<1x8x8xf32> to vector<8x8xf32>
    %c8 = arith.constant 8 : index
    %c0_33 = arith.constant 0 : index
    %c0_34 = arith.constant 0 : index
    %66 = vector.load %arg2[%c8, %c0_33, %c0_34] : memref<30x8x100xf32, #tpu.memory_space<vmem>>, vector<1x8x100xf32>
    %67 = vector.shape_cast %66 : vector<1x8x100xf32> to vector<8x100xf32>
    %cst_35 = arith.constant dense<0.000000e+00> : vector<8x100xf32>
    %68 = tpu.matmul %65, %67, %cst_35 {dimension_numbers = #tpu.dot_dimension_numbers<[1], [0], [0], [1], [0, 0, 1, 1], [], []>} : vector<8x8xf32>, vector<8x100xf32>, vector<8x100xf32> -> vector<8x100xf32>
    %69 = arith.addf %62, %68 : vector<8x100xf32>
    %70 = vector.extract_strided_slice %0 {offsets = [0, 9, 0, 0], sizes = [1, 1, 8, 8], strides = [1, 1, 1, 1]} : vector<1x10x8x8xf32> to vector<1x1x8x8xf32>
    %71 = vector.shape_cast %70 : vector<1x1x8x8xf32> to vector<1x8x8xf32>
    %72 = vector.shape_cast %71 : vector<1x8x8xf32> to vector<8x8xf32>
    %c9 = arith.constant 9 : index
    %c0_36 = arith.constant 0 : index
    %c0_37 = arith.constant 0 : index
    %73 = vector.load %arg2[%c9, %c0_36, %c0_37] : memref<30x8x100xf32, #tpu.memory_space<vmem>>, vector<1x8x100xf32>
    %74 = vector.shape_cast %73 : vector<1x8x100xf32> to vector<8x100xf32>
    %cst_38 = arith.constant dense<0.000000e+00> : vector<8x100xf32>
    %75 = tpu.matmul %72, %74, %cst_38 {dimension_numbers = #tpu.dot_dimension_numbers<[1], [0], [0], [1], [0, 0, 1, 1], [], []>} : vector<8x8xf32>, vector<8x100xf32>, vector<8x100xf32> -> vector<8x100xf32>
    %76 = arith.addf %69, %75 : vector<8x100xf32>
    %c0_39 = arith.constant 0 : index
    %c0_40 = arith.constant 0 : index
    %c0_41 = arith.constant 0 : index
    %77 = vector.load %arg7[%c0_39, %c0_40, %c0_41] : memref<1x10x100xf32, #tpu.memory_space<vmem>>, vector<1x8x100xf32>
    %78 = vector.shape_cast %76 : vector<8x100xf32> to vector<1x8x100xf32>
    %79 = arith.addf %77, %78 : vector<1x8x100xf32>
    %c0_42 = arith.constant 0 : index
    %c0_43 = arith.constant 0 : index
    %c0_44 = arith.constant 0 : index
    %80 = vector.load %arg7[%c0_42, %c0_43, %c0_44] : memref<1x10x100xf32, #tpu.memory_space<vmem>>, vector<1x8x100xf32>
    tpu.vector_store %arg7[%c0_42, %c0_43, %c0_44], %79 {strides = array<i32>} : memref<1x10x100xf32, #tpu.memory_space<vmem>>, vector<1x8x100xf32>,
    %cst_45 = arith.constant 0.000000e+00 : f32
    %81 = vector.broadcast %cst_45 : f32 to vector<8x100xf32>
    %82 = vector.extract_strided_slice %0 {offsets = [0, 0, 0, 0], sizes = [1, 1, 8, 8], strides = [1, 1, 1, 1]} : vector<1x10x8x8xf32> to vector<1x1x8x8xf32>
    %83 = vector.shape_cast %82 : vector<1x1x8x8xf32> to vector<1x8x8xf32>
    %84 = vector.shape_cast %83 : vector<1x8x8xf32> to vector<8x8xf32>
    %c10 = arith.constant 10 : index
    %c0_46 = arith.constant 0 : index
    %c0_47 = arith.constant 0 : index
    %85 = vector.load %arg2[%c10, %c0_46, %c0_47] : memref<30x8x100xf32, #tpu.memory_space<vmem>>, vector<1x8x100xf32>
    %86 = vector.shape_cast %85 : vector<1x8x100xf32> to vector<8x100xf32>
    %cst_48 = arith.constant dense<0.000000e+00> : vector<8x100xf32>
    %87 = tpu.matmul %84, %86, %cst_48 {dimension_numbers = #tpu.dot_dimension_numbers<[1], [0], [0], [1], [0, 0, 1, 1], [], []>} : vector<8x8xf32>, vector<8x100xf32>, vector<8x100xf32> -> vector<8x100xf32>
    %88 = arith.addf %81, %87 : vector<8x100xf32>
    %89 = vector.extract_strided_slice %0 {offsets = [0, 1, 0, 0], sizes = [1, 1, 8, 8], strides = [1, 1, 1, 1]} : vector<1x10x8x8xf32> to vector<1x1x8x8xf32>
    %90 = vector.shape_cast %89 : vector<1x1x8x8xf32> to vector<1x8x8xf32>
    %91 = vector.shape_cast %90 : vector<1x8x8xf32> to vector<8x8xf32>
    %c11 = arith.constant 11 : index
    %c0_49 = arith.constant 0 : index
    %c0_50 = arith.constant 0 : index
    %92 = vector.load %arg2[%c11, %c0_49, %c0_50] : memref<30x8x100xf32, #tpu.memory_space<vmem>>, vector<1x8x100xf32>
    %93 = vector.shape_cast %92 : vector<1x8x100xf32> to vector<8x100xf32>
    %cst_51 = arith.constant dense<0.000000e+00> : vector<8x100xf32>
    %94 = tpu.matmul %91, %93, %cst_51 {dimension_numbers = #tpu.dot_dimension_numbers<[1], [0], [0], [1], [0, 0, 1, 1], [], []>} : vector<8x8xf32>, vector<8x100xf32>, vector<8x100xf32> -> vector<8x100xf32>
    %95 = arith.addf %88, %94 : vector<8x100xf32>
    %96 = vector.extract_strided_slice %0 {offsets = [0, 2, 0, 0], sizes = [1, 1, 8, 8], strides = [1, 1, 1, 1]} : vector<1x10x8x8xf32> to vector<1x1x8x8xf32>
    %97 = vector.shape_cast %96 : vector<1x1x8x8xf32> to vector<1x8x8xf32>
    %98 = vector.shape_cast %97 : vector<1x8x8xf32> to vector<8x8xf32>
    %c12 = arith.constant 12 : index
    %c0_52 = arith.constant 0 : index
    %c0_53 = arith.constant 0 : index
    %99 = vector.load %arg2[%c12, %c0_52, %c0_53] : memref<30x8x100xf32, #tpu.memory_space<vmem>>, vector<1x8x100xf32>
    %100 = vector.shape_cast %99 : vector<1x8x100xf32> to vector<8x100xf32>
    %cst_54 = arith.constant dense<0.000000e+00> : vector<8x100xf32>
    %101 = tpu.matmul %98, %100, %cst_54 {dimension_numbers = #tpu.dot_dimension_numbers<[1], [0], [0], [1], [0, 0, 1, 1], [], []>} : vector<8x8xf32>, vector<8x100xf32>, vector<8x100xf32> -> vector<8x100xf32>
    %102 = arith.addf %95, %101 : vector<8x100xf32>
    %103 = vector.extract_strided_slice %0 {offsets = [0, 3, 0, 0], sizes = [1, 1, 8, 8], strides = [1, 1, 1, 1]} : vector<1x10x8x8xf32> to vector<1x1x8x8xf32>
    %104 = vector.shape_cast %103 : vector<1x1x8x8xf32> to vector<1x8x8xf32>
    %105 = vector.shape_cast %104 : vector<1x8x8xf32> to vector<8x8xf32>
    %c13 = arith.constant 13 : index
    %c0_55 = arith.constant 0 : index
    %c0_56 = arith.constant 0 : index
    %106 = vector.load %arg2[%c13, %c0_55, %c0_56] : memref<30x8x100xf32, #tpu.memory_space<vmem>>, vector<1x8x100xf32>
    %107 = vector.shape_cast %106 : vector<1x8x100xf32> to vector<8x100xf32>
    %cst_57 = arith.constant dense<0.000000e+00> : vector<8x100xf32>
    %108 = tpu.matmul %105, %107, %cst_57 {dimension_numbers = #tpu.dot_dimension_numbers<[1], [0], [0], [1], [0, 0, 1, 1], [], []>} : vector<8x8xf32>, vector<8x100xf32>, vector<8x100xf32> -> vector<8x100xf32>
    %109 = arith.addf %102, %108 : vector<8x100xf32>
    %110 = vector.extract_strided_slice %0 {offsets = [0, 4, 0, 0], sizes = [1, 1, 8, 8], strides = [1, 1, 1, 1]} : vector<1x10x8x8xf32> to vector<1x1x8x8xf32>
    %111 = vector.shape_cast %110 : vector<1x1x8x8xf32> to vector<1x8x8xf32>
    %112 = vector.shape_cast %111 : vector<1x8x8xf32> to vector<8x8xf32>
    %c14 = arith.constant 14 : index
    %c0_58 = arith.constant 0 : index
    %c0_59 = arith.constant 0 : index
    %113 = vector.load %arg2[%c14, %c0_58, %c0_59] : memref<30x8x100xf32, #tpu.memory_space<vmem>>, vector<1x8x100xf32>
    %114 = vector.shape_cast %113 : vector<1x8x100xf32> to vector<8x100xf32>
    %cst_60 = arith.constant dense<0.000000e+00> : vector<8x100xf32>
    %115 = tpu.matmul %112, %114, %cst_60 {dimension_numbers = #tpu.dot_dimension_numbers<[1], [0], [0], [1], [0, 0, 1, 1], [], []>} : vector<8x8xf32>, vector<8x100xf32>, vector<8x100xf32> -> vector<8x100xf32>
    %116 = arith.addf %109, %115 : vector<8x100xf32>
    %117 = vector.extract_strided_slice %0 {offsets = [0, 5, 0, 0], sizes = [1, 1, 8, 8], strides = [1, 1, 1, 1]} : vector<1x10x8x8xf32> to vector<1x1x8x8xf32>
    %118 = vector.shape_cast %117 : vector<1x1x8x8xf32> to vector<1x8x8xf32>
    %119 = vector.shape_cast %118 : vector<1x8x8xf32> to vector<8x8xf32>
    %c15 = arith.constant 15 : index
    %c0_61 = arith.constant 0 : index
    %c0_62 = arith.constant 0 : index
    %120 = vector.load %arg2[%c15, %c0_61, %c0_62] : memref<30x8x100xf32, #tpu.memory_space<vmem>>, vector<1x8x100xf32>
    %121 = vector.shape_cast %120 : vector<1x8x100xf32> to vector<8x100xf32>
    %cst_63 = arith.constant dense<0.000000e+00> : vector<8x100xf32>
    %122 = tpu.matmul %119, %121, %cst_63 {dimension_numbers = #tpu.dot_dimension_numbers<[1], [0], [0], [1], [0, 0, 1, 1], [], []>} : vector<8x8xf32>, vector<8x100xf32>, vector<8x100xf32> -> vector<8x100xf32>
    %123 = arith.addf %116, %122 : vector<8x100xf32>
    %124 = vector.extract_strided_slice %0 {offsets = [0, 6, 0, 0], sizes = [1, 1, 8, 8], strides = [1, 1, 1, 1]} : vector<1x10x8x8xf32> to vector<1x1x8x8xf32>
    %125 = vector.shape_cast %124 : vector<1x1x8x8xf32> to vector<1x8x8xf32>
    %126 = vector.shape_cast %125 : vector<1x8x8xf32> to vector<8x8xf32>
    %c16 = arith.constant 16 : index
    %c0_64 = arith.constant 0 : index
    %c0_65 = arith.constant 0 : index
    %127 = vector.load %arg2[%c16, %c0_64, %c0_65] : memref<30x8x100xf32, #tpu.memory_space<vmem>>, vector<1x8x100xf32>
    %128 = vector.shape_cast %127 : vector<1x8x100xf32> to vector<8x100xf32>
    %cst_66 = arith.constant dense<0.000000e+00> : vector<8x100xf32>
    %129 = tpu.matmul %126, %128, %cst_66 {dimension_numbers = #tpu.dot_dimension_numbers<[1], [0], [0], [1], [0, 0, 1, 1], [], []>} : vector<8x8xf32>, vector<8x100xf32>, vector<8x100xf32> -> vector<8x100xf32>
    %130 = arith.addf %123, %129 : vector<8x100xf32>
    %131 = vector.extract_strided_slice %0 {offsets = [0, 7, 0, 0], sizes = [1, 1, 8, 8], strides = [1, 1, 1, 1]} : vector<1x10x8x8xf32> to vector<1x1x8x8xf32>
    %132 = vector.shape_cast %131 : vector<1x1x8x8xf32> to vector<1x8x8xf32>
    %133 = vector.shape_cast %132 : vector<1x8x8xf32> to vector<8x8xf32>
    %c17 = arith.constant 17 : index
    %c0_67 = arith.constant 0 : index
    %c0_68 = arith.constant 0 : index
    %134 = vector.load %arg2[%c17, %c0_67, %c0_68] : memref<30x8x100xf32, #tpu.memory_space<vmem>>, vector<1x8x100xf32>
    %135 = vector.shape_cast %134 : vector<1x8x100xf32> to vector<8x100xf32>
    %cst_69 = arith.constant dense<0.000000e+00> : vector<8x100xf32>
    %136 = tpu.matmul %133, %135, %cst_69 {dimension_numbers = #tpu.dot_dimension_numbers<[1], [0], [0], [1], [0, 0, 1, 1], [], []>} : vector<8x8xf32>, vector<8x100xf32>, vector<8x100xf32> -> vector<8x100xf32>
    %137 = arith.addf %130, %136 : vector<8x100xf32>
    %138 = vector.extract_strided_slice %0 {offsets = [0, 8, 0, 0], sizes = [1, 1, 8, 8], strides = [1, 1, 1, 1]} : vector<1x10x8x8xf32> to vector<1x1x8x8xf32>
    %139 = vector.shape_cast %138 : vector<1x1x8x8xf32> to vector<1x8x8xf32>
    %140 = vector.shape_cast %139 : vector<1x8x8xf32> to vector<8x8xf32>
    %c18 = arith.constant 18 : index
    %c0_70 = arith.constant 0 : index
    %c0_71 = arith.constant 0 : index
    %141 = vector.load %arg2[%c18, %c0_70, %c0_71] : memref<30x8x100xf32, #tpu.memory_space<vmem>>, vector<1x8x100xf32>
    %142 = vector.shape_cast %141 : vector<1x8x100xf32> to vector<8x100xf32>
    %cst_72 = arith.constant dense<0.000000e+00> : vector<8x100xf32>
    %143 = tpu.matmul %140, %142, %cst_72 {dimension_numbers = #tpu.dot_dimension_numbers<[1], [0], [0], [1], [0, 0, 1, 1], [], []>} : vector<8x8xf32>, vector<8x100xf32>, vector<8x100xf32> -> vector<8x100xf32>
    %144 = arith.addf %137, %143 : vector<8x100xf32>
    %145 = vector.extract_strided_slice %0 {offsets = [0, 9, 0, 0], sizes = [1, 1, 8, 8], strides = [1, 1, 1, 1]} : vector<1x10x8x8xf32> to vector<1x1x8x8xf32>
    %146 = vector.shape_cast %145 : vector<1x1x8x8xf32> to vector<1x8x8xf32>
    %147 = vector.shape_cast %146 : vector<1x8x8xf32> to vector<8x8xf32>
    %c19 = arith.constant 19 : index
    %c0_73 = arith.constant 0 : index
    %c0_74 = arith.constant 0 : index
    %148 = vector.load %arg2[%c19, %c0_73, %c0_74] : memref<30x8x100xf32, #tpu.memory_space<vmem>>, vector<1x8x100xf32>
    %149 = vector.shape_cast %148 : vector<1x8x100xf32> to vector<8x100xf32>
    %cst_75 = arith.constant dense<0.000000e+00> : vector<8x100xf32>
    %150 = tpu.matmul %147, %149, %cst_75 {dimension_numbers = #tpu.dot_dimension_numbers<[1], [0], [0], [1], [0, 0, 1, 1], [], []>} : vector<8x8xf32>, vector<8x100xf32>, vector<8x100xf32> -> vector<8x100xf32>
    %151 = arith.addf %144, %150 : vector<8x100xf32>
    %c0_76 = arith.constant 0 : index
    %c1_77 = arith.constant 1 : index
    %c0_78 = arith.constant 0 : index
    %152 = vector.load %arg7[%c0_76, %c1_77, %c0_78] : memref<1x10x100xf32, #tpu.memory_space<vmem>>, vector<1x8x100xf32>
    %153 = vector.shape_cast %151 : vector<8x100xf32> to vector<1x8x100xf32>
    %154 = arith.addf %152, %153 : vector<1x8x100xf32>
    %c0_79 = arith.constant 0 : index
    %c1_80 = arith.constant 1 : index
    %c0_81 = arith.constant 0 : index
    %155 = vector.load %arg7[%c0_79, %c1_80, %c0_81] : memref<1x10x100xf32, #tpu.memory_space<vmem>>, vector<1x8x100xf32>
    tpu.vector_store %arg7[%c0_79, %c1_80, %c0_81], %154 {strides = array<i32>} : memref<1x10x100xf32, #tpu.memory_space<vmem>>, vector<1x8x100xf32>,
    %cst_82 = arith.constant 0.000000e+00 : f32
    %156 = vector.broadcast %cst_82 : f32 to vector<8x100xf32>
    %157 = vector.extract_strided_slice %0 {offsets = [0, 0, 0, 0], sizes = [1, 1, 8, 8], strides = [1, 1, 1, 1]} : vector<1x10x8x8xf32> to vector<1x1x8x8xf32>
    %158 = vector.shape_cast %157 : vector<1x1x8x8xf32> to vector<1x8x8xf32>
    %159 = vector.shape_cast %158 : vector<1x8x8xf32> to vector<8x8xf32>
    %c20 = arith.constant 20 : index
    %c0_83 = arith.constant 0 : index
    %c0_84 = arith.constant 0 : index
    %160 = vector.load %arg2[%c20, %c0_83, %c0_84] : memref<30x8x100xf32, #tpu.memory_space<vmem>>, vector<1x8x100xf32>
    %161 = vector.shape_cast %160 : vector<1x8x100xf32> to vector<8x100xf32>
    %cst_85 = arith.constant dense<0.000000e+00> : vector<8x100xf32>
    %162 = tpu.matmul %159, %161, %cst_85 {dimension_numbers = #tpu.dot_dimension_numbers<[1], [0], [0], [1], [0, 0, 1, 1], [], []>} : vector<8x8xf32>, vector<8x100xf32>, vector<8x100xf32> -> vector<8x100xf32>
    %163 = arith.addf %156, %162 : vector<8x100xf32>
    %164 = vector.extract_strided_slice %0 {offsets = [0, 1, 0, 0], sizes = [1, 1, 8, 8], strides = [1, 1, 1, 1]} : vector<1x10x8x8xf32> to vector<1x1x8x8xf32>
    %165 = vector.shape_cast %164 : vector<1x1x8x8xf32> to vector<1x8x8xf32>
    %166 = vector.shape_cast %165 : vector<1x8x8xf32> to vector<8x8xf32>
    %c21 = arith.constant 21 : index
    %c0_86 = arith.constant 0 : index
    %c0_87 = arith.constant 0 : index
    %167 = vector.load %arg2[%c21, %c0_86, %c0_87] : memref<30x8x100xf32, #tpu.memory_space<vmem>>, vector<1x8x100xf32>
    %168 = vector.shape_cast %167 : vector<1x8x100xf32> to vector<8x100xf32>
    %cst_88 = arith.constant dense<0.000000e+00> : vector<8x100xf32>
    %169 = tpu.matmul %166, %168, %cst_88 {dimension_numbers = #tpu.dot_dimension_numbers<[1], [0], [0], [1], [0, 0, 1, 1], [], []>} : vector<8x8xf32>, vector<8x100xf32>, vector<8x100xf32> -> vector<8x100xf32>
    %170 = arith.addf %163, %169 : vector<8x100xf32>
    %171 = vector.extract_strided_slice %0 {offsets = [0, 2, 0, 0], sizes = [1, 1, 8, 8], strides = [1, 1, 1, 1]} : vector<1x10x8x8xf32> to vector<1x1x8x8xf32>
    %172 = vector.shape_cast %171 : vector<1x1x8x8xf32> to vector<1x8x8xf32>
    %173 = vector.shape_cast %172 : vector<1x8x8xf32> to vector<8x8xf32>
    %c22 = arith.constant 22 : index
    %c0_89 = arith.constant 0 : index
    %c0_90 = arith.constant 0 : index
    %174 = vector.load %arg2[%c22, %c0_89, %c0_90] : memref<30x8x100xf32, #tpu.memory_space<vmem>>, vector<1x8x100xf32>
    %175 = vector.shape_cast %174 : vector<1x8x100xf32> to vector<8x100xf32>
    %cst_91 = arith.constant dense<0.000000e+00> : vector<8x100xf32>
    %176 = tpu.matmul %173, %175, %cst_91 {dimension_numbers = #tpu.dot_dimension_numbers<[1], [0], [0], [1], [0, 0, 1, 1], [], []>} : vector<8x8xf32>, vector<8x100xf32>, vector<8x100xf32> -> vector<8x100xf32>
    %177 = arith.addf %170, %176 : vector<8x100xf32>
    %178 = vector.extract_strided_slice %0 {offsets = [0, 3, 0, 0], sizes = [1, 1, 8, 8], strides = [1, 1, 1, 1]} : vector<1x10x8x8xf32> to vector<1x1x8x8xf32>
    %179 = vector.shape_cast %178 : vector<1x1x8x8xf32> to vector<1x8x8xf32>
    %180 = vector.shape_cast %179 : vector<1x8x8xf32> to vector<8x8xf32>
    %c23 = arith.constant 23 : index
    %c0_92 = arith.constant 0 : index
    %c0_93 = arith.constant 0 : index
    %181 = vector.load %arg2[%c23, %c0_92, %c0_93] : memref<30x8x100xf32, #tpu.memory_space<vmem>>, vector<1x8x100xf32>
    %182 = vector.shape_cast %181 : vector<1x8x100xf32> to vector<8x100xf32>
    %cst_94 = arith.constant dense<0.000000e+00> : vector<8x100xf32>
    %183 = tpu.matmul %180, %182, %cst_94 {dimension_numbers = #tpu.dot_dimension_numbers<[1], [0], [0], [1], [0, 0, 1, 1], [], []>} : vector<8x8xf32>, vector<8x100xf32>, vector<8x100xf32> -> vector<8x100xf32>
    %184 = arith.addf %177, %183 : vector<8x100xf32>
    %185 = vector.extract_strided_slice %0 {offsets = [0, 4, 0, 0], sizes = [1, 1, 8, 8], strides = [1, 1, 1, 1]} : vector<1x10x8x8xf32> to vector<1x1x8x8xf32>
    %186 = vector.shape_cast %185 : vector<1x1x8x8xf32> to vector<1x8x8xf32>
    %187 = vector.shape_cast %186 : vector<1x8x8xf32> to vector<8x8xf32>
    %c24 = arith.constant 24 : index
    %c0_95 = arith.constant 0 : index
    %c0_96 = arith.constant 0 : index
    %188 = vector.load %arg2[%c24, %c0_95, %c0_96] : memref<30x8x100xf32, #tpu.memory_space<vmem>>, vector<1x8x100xf32>
    %189 = vector.shape_cast %188 : vector<1x8x100xf32> to vector<8x100xf32>
    %cst_97 = arith.constant dense<0.000000e+00> : vector<8x100xf32>
    %190 = tpu.matmul %187, %189, %cst_97 {dimension_numbers = #tpu.dot_dimension_numbers<[1], [0], [0], [1], [0, 0, 1, 1], [], []>} : vector<8x8xf32>, vector<8x100xf32>, vector<8x100xf32> -> vector<8x100xf32>
    %191 = arith.addf %184, %190 : vector<8x100xf32>
    %192 = vector.extract_strided_slice %0 {offsets = [0, 5, 0, 0], sizes = [1, 1, 8, 8], strides = [1, 1, 1, 1]} : vector<1x10x8x8xf32> to vector<1x1x8x8xf32>
    %193 = vector.shape_cast %192 : vector<1x1x8x8xf32> to vector<1x8x8xf32>
    %194 = vector.shape_cast %193 : vector<1x8x8xf32> to vector<8x8xf32>
    %c25 = arith.constant 25 : index
    %c0_98 = arith.constant 0 : index
    %c0_99 = arith.constant 0 : index
    %195 = vector.load %arg2[%c25, %c0_98, %c0_99] : memref<30x8x100xf32, #tpu.memory_space<vmem>>, vector<1x8x100xf32>
    %196 = vector.shape_cast %195 : vector<1x8x100xf32> to vector<8x100xf32>
    %cst_100 = arith.constant dense<0.000000e+00> : vector<8x100xf32>
    %197 = tpu.matmul %194, %196, %cst_100 {dimension_numbers = #tpu.dot_dimension_numbers<[1], [0], [0], [1], [0, 0, 1, 1], [], []>} : vector<8x8xf32>, vector<8x100xf32>, vector<8x100xf32> -> vector<8x100xf32>
    %198 = arith.addf %191, %197 : vector<8x100xf32>
    %199 = vector.extract_strided_slice %0 {offsets = [0, 6, 0, 0], sizes = [1, 1, 8, 8], strides = [1, 1, 1, 1]} : vector<1x10x8x8xf32> to vector<1x1x8x8xf32>
    %200 = vector.shape_cast %199 : vector<1x1x8x8xf32> to vector<1x8x8xf32>
    %201 = vector.shape_cast %200 : vector<1x8x8xf32> to vector<8x8xf32>
    %c26 = arith.constant 26 : index
    %c0_101 = arith.constant 0 : index
    %c0_102 = arith.constant 0 : index
    %202 = vector.load %arg2[%c26, %c0_101, %c0_102] : memref<30x8x100xf32, #tpu.memory_space<vmem>>, vector<1x8x100xf32>
    %203 = vector.shape_cast %202 : vector<1x8x100xf32> to vector<8x100xf32>
    %cst_103 = arith.constant dense<0.000000e+00> : vector<8x100xf32>
    %204 = tpu.matmul %201, %203, %cst_103 {dimension_numbers = #tpu.dot_dimension_numbers<[1], [0], [0], [1], [0, 0, 1, 1], [], []>} : vector<8x8xf32>, vector<8x100xf32>, vector<8x100xf32> -> vector<8x100xf32>
    %205 = arith.addf %198, %204 : vector<8x100xf32>
    %206 = vector.extract_strided_slice %0 {offsets = [0, 7, 0, 0], sizes = [1, 1, 8, 8], strides = [1, 1, 1, 1]} : vector<1x10x8x8xf32> to vector<1x1x8x8xf32>
    %207 = vector.shape_cast %206 : vector<1x1x8x8xf32> to vector<1x8x8xf32>
    %208 = vector.shape_cast %207 : vector<1x8x8xf32> to vector<8x8xf32>
    %c27 = arith.constant 27 : index
    %c0_104 = arith.constant 0 : index
    %c0_105 = arith.constant 0 : index
    %209 = vector.load %arg2[%c27, %c0_104, %c0_105] : memref<30x8x100xf32, #tpu.memory_space<vmem>>, vector<1x8x100xf32>
    %210 = vector.shape_cast %209 : vector<1x8x100xf32> to vector<8x100xf32>
    %cst_106 = arith.constant dense<0.000000e+00> : vector<8x100xf32>
    %211 = tpu.matmul %208, %210, %cst_106 {dimension_numbers = #tpu.dot_dimension_numbers<[1], [0], [0], [1], [0, 0, 1, 1], [], []>} : vector<8x8xf32>, vector<8x100xf32>, vector<8x100xf32> -> vector<8x100xf32>
    %212 = arith.addf %205, %211 : vector<8x100xf32>
    %213 = vector.extract_strided_slice %0 {offsets = [0, 8, 0, 0], sizes = [1, 1, 8, 8], strides = [1, 1, 1, 1]} : vector<1x10x8x8xf32> to vector<1x1x8x8xf32>
    %214 = vector.shape_cast %213 : vector<1x1x8x8xf32> to vector<1x8x8xf32>
    %215 = vector.shape_cast %214 : vector<1x8x8xf32> to vector<8x8xf32>
    %c28 = arith.constant 28 : index
    %c0_107 = arith.constant 0 : index
    %c0_108 = arith.constant 0 : index
    %216 = vector.load %arg2[%c28, %c0_107, %c0_108] : memref<30x8x100xf32, #tpu.memory_space<vmem>>, vector<1x8x100xf32>
    %217 = vector.shape_cast %216 : vector<1x8x100xf32> to vector<8x100xf32>
    %cst_109 = arith.constant dense<0.000000e+00> : vector<8x100xf32>
    %218 = tpu.matmul %215, %217, %cst_109 {dimension_numbers = #tpu.dot_dimension_numbers<[1], [0], [0], [1], [0, 0, 1, 1], [], []>} : vector<8x8xf32>, vector<8x100xf32>, vector<8x100xf32> -> vector<8x100xf32>
    %219 = arith.addf %212, %218 : vector<8x100xf32>
    %220 = vector.extract_strided_slice %0 {offsets = [0, 9, 0, 0], sizes = [1, 1, 8, 8], strides = [1, 1, 1, 1]} : vector<1x10x8x8xf32> to vector<1x1x8x8xf32>
    %221 = vector.shape_cast %220 : vector<1x1x8x8xf32> to vector<1x8x8xf32>
    %222 = vector.shape_cast %221 : vector<1x8x8xf32> to vector<8x8xf32>
    %c29 = arith.constant 29 : index
    %c0_110 = arith.constant 0 : index
    %c0_111 = arith.constant 0 : index
    %223 = vector.load %arg2[%c29, %c0_110, %c0_111] : memref<30x8x100xf32, #tpu.memory_space<vmem>>, vector<1x8x100xf32>
    %224 = vector.shape_cast %223 : vector<1x8x100xf32> to vector<8x100xf32>
    %cst_112 = arith.constant dense<0.000000e+00> : vector<8x100xf32>
    %225 = tpu.matmul %222, %224, %cst_112 {dimension_numbers = #tpu.dot_dimension_numbers<[1], [0], [0], [1], [0, 0, 1, 1], [], []>} : vector<8x8xf32>, vector<8x100xf32>, vector<8x100xf32> -> vector<8x100xf32>
    %226 = arith.addf %219, %225 : vector<8x100xf32>
    %c0_113 = arith.constant 0 : index
    %c2_114 = arith.constant 2 : index
    %c0_115 = arith.constant 0 : index
    %227 = vector.load %arg7[%c0_113, %c2_114, %c0_115] : memref<1x10x100xf32, #tpu.memory_space<vmem>>, vector<1x8x100xf32>
    %228 = vector.shape_cast %226 : vector<8x100xf32> to vector<1x8x100xf32>
    %229 = arith.addf %227, %228 : vector<1x8x100xf32>
    %c0_116 = arith.constant 0 : index
    %c2_117 = arith.constant 2 : index
    %c0_118 = arith.constant 0 : index
    %230 = vector.load %arg7[%c0_116, %c2_117, %c0_118] : memref<1x10x100xf32, #tpu.memory_space<vmem>>, vector<1x8x100xf32>
    tpu.vector_store %arg7[%c0_116, %c2_117, %c0_118], %229 {strides = array<i32>} : memref<1x10x100xf32, #tpu.memory_space<vmem>>, vector<1x8x100xf32>,
    %c0_119 = arith.constant 0 : index
    %c0_120 = arith.constant 0 : index
    %c0_121 = arith.constant 0 : index
    %231 = vector.load %arg7[%c0_119, %c0_120, %c0_121] : memref<1x10x100xf32, #tpu.memory_space<vmem>>, vector<1x10x100xf32>
    %cst_122 = arith.constant 0.000000e+00 : f32
    %232 = vector.broadcast %cst_122 : f32 to vector<1x10x100xf32>
    %233 = arith.maximumf %231, %232 : vector<1x10x100xf32>
    %234 = vector.shape_cast %233 : vector<1x10x100xf32> to vector<10x100xf32>
    %c0_123 = arith.constant 0 : index
    %c0_124 = arith.constant 0 : index
    %235 = vector.load %arg5[%c0_123, %c0_124] : memref<1x120xf32, #tpu.memory_space<vmem>>, vector<1x120xf32>
    %236 = vector.shape_cast %235 : vector<1x120xf32> to vector<1x1x120xf32>
    %237 = vector.shape_cast %236 : vector<1x1x120xf32> to vector<1x1x120xf32>
    %238 = vector.broadcast %237 : vector<1x1x120xf32> to vector<1x12x120xf32>
    %c0_125 = arith.constant 0 : index
    %c0_126 = arith.constant 0 : index
    %c0_127 = arith.constant 0 : index
    %239 = vector.load %arg8[%c0_125, %c0_126, %c0_127] : memref<1x12x120xf32, #tpu.memory_space<vmem>>, vector<1x12x120xf32>
    tpu.vector_store %arg8[%c0_125, %c0_126, %c0_127], %238 {strides = array<i32>} : memref<1x12x120xf32, #tpu.memory_space<vmem>>, vector<1x12x120xf32>,
    %c0_128 = arith.constant 0 : index
    %c0_129 = arith.constant 0 : index
    %c0_130 = arith.constant 0 : index
    %240 = vector.load %arg4[%c0_128, %c0_129, %c0_130] : memref<3x100x120xf32, #tpu.memory_space<vmem>>, vector<1x100x120xf32>
    %241 = vector.shape_cast %240 : vector<1x100x120xf32> to vector<100x120xf32>
    %cst_131 = arith.constant dense<0.000000e+00> : vector<10x120xf32>
    %242 = tpu.matmul %234, %241, %cst_131 {dimension_numbers = #tpu.dot_dimension_numbers<[1], [0], [0], [1], [0, 0, 1, 1], [], []>} : vector<10x100xf32>, vector<100x120xf32>, vector<10x120xf32> -> vector<10x120xf32>
    %c0_132 = arith.constant 0 : index
    %c0_133 = arith.constant 0 : index
    %c0_134 = arith.constant 0 : index
    %243 = vector.load %arg8[%c0_132, %c0_133, %c0_134] : memref<1x12x120xf32, #tpu.memory_space<vmem>>, vector<1x10x120xf32>
    %244 = vector.shape_cast %242 : vector<10x120xf32> to vector<1x10x120xf32>
    %245 = arith.addf %243, %244 : vector<1x10x120xf32>
    %c0_135 = arith.constant 0 : index
    %c0_136 = arith.constant 0 : index
    %c0_137 = arith.constant 0 : index
    %246 = vector.load %arg8[%c0_135, %c0_136, %c0_137] : memref<1x12x120xf32, #tpu.memory_space<vmem>>, vector<1x10x120xf32>
    tpu.vector_store %arg8[%c0_135, %c0_136, %c0_137], %245 {strides = array<i32>} : memref<1x12x120xf32, #tpu.memory_space<vmem>>, vector<1x10x120xf32>,
    %c1_138 = arith.constant 1 : index
    %c0_139 = arith.constant 0 : index
    %c0_140 = arith.constant 0 : index
    %247 = vector.load %arg4[%c1_138, %c0_139, %c0_140] : memref<3x100x120xf32, #tpu.memory_space<vmem>>, vector<1x100x120xf32>
    %248 = vector.shape_cast %247 : vector<1x100x120xf32> to vector<100x120xf32>
    %cst_141 = arith.constant dense<0.000000e+00> : vector<10x120xf32>
    %249 = tpu.matmul %234, %248, %cst_141 {dimension_numbers = #tpu.dot_dimension_numbers<[1], [0], [0], [1], [0, 0, 1, 1], [], []>} : vector<10x100xf32>, vector<100x120xf32>, vector<10x120xf32> -> vector<10x120xf32>
    %c0_142 = arith.constant 0 : index
    %c1_143 = arith.constant 1 : index
    %c0_144 = arith.constant 0 : index
    %250 = vector.load %arg8[%c0_142, %c1_143, %c0_144] : memref<1x12x120xf32, #tpu.memory_space<vmem>>, vector<1x10x120xf32>
    %251 = vector.shape_cast %249 : vector<10x120xf32> to vector<1x10x120xf32>
    %252 = arith.addf %250, %251 : vector<1x10x120xf32>
    %c0_145 = arith.constant 0 : index
    %c1_146 = arith.constant 1 : index
    %c0_147 = arith.constant 0 : index
    %253 = vector.load %arg8[%c0_145, %c1_146, %c0_147] : memref<1x12x120xf32, #tpu.memory_space<vmem>>, vector<1x10x120xf32>
    tpu.vector_store %arg8[%c0_145, %c1_146, %c0_147], %252 {strides = array<i32>} : memref<1x12x120xf32, #tpu.memory_space<vmem>>, vector<1x10x120xf32>,
    %c2_148 = arith.constant 2 : index
    %c0_149 = arith.constant 0 : index
    %c0_150 = arith.constant 0 : index
    %254 = vector.load %arg4[%c2_148, %c0_149, %c0_150] : memref<3x100x120xf32, #tpu.memory_space<vmem>>, vector<1x100x120xf32>
    %255 = vector.shape_cast %254 : vector<1x100x120xf32> to vector<100x120xf32>
    %cst_151 = arith.constant dense<0.000000e+00> : vector<10x120xf32>
    %256 = tpu.matmul %234, %255, %cst_151 {dimension_numbers = #tpu.dot_dimension_numbers<[1], [0], [0], [1], [0, 0, 1, 1], [], []>} : vector<10x100xf32>, vector<100x120xf32>, vector<10x120xf32> -> vector<10x120xf32>
    %c0_152 = arith.constant 0 : index
    %c2_153 = arith.constant 2 : index
    %c0_154 = arith.constant 0 : index
    %257 = vector.load %arg8[%c0_152, %c2_153, %c0_154] : memref<1x12x120xf32, #tpu.memory_space<vmem>>, vector<1x10x120xf32>
    %258 = vector.shape_cast %256 : vector<10x120xf32> to vector<1x10x120xf32>
    %259 = arith.addf %257, %258 : vector<1x10x120xf32>
    %c0_155 = arith.constant 0 : index
    %c2_156 = arith.constant 2 : index
    %c0_157 = arith.constant 0 : index
    %260 = vector.load %arg8[%c0_155, %c2_156, %c0_157] : memref<1x12x120xf32, #tpu.memory_space<vmem>>, vector<1x10x120xf32>
    tpu.vector_store %arg8[%c0_155, %c2_156, %c0_157], %259 {strides = array<i32>} : memref<1x12x120xf32, #tpu.memory_space<vmem>>, vector<1x10x120xf32>,
    %c0_158 = arith.constant 0 : index
    %c0_159 = arith.constant 0 : index
    %c0_160 = arith.constant 0 : index
    %261 = vector.load %arg8[%c0_158, %c0_159, %c0_160] : memref<1x12x120xf32, #tpu.memory_space<vmem>>, vector<1x12x12xf32>
    %c0_161 = arith.constant 0 : index
    %c0_162 = arith.constant 0 : index
    %c0_163 = arith.constant 0 : index
    %c0_164 = arith.constant 0 : index
    %262 = vector.load %arg6[%c0_161, %c0_162, %c0_163, %c0_164] : memref<1x10x12x12xf32, #tpu.memory_space<vmem>>, vector<1x1x12x12xf32>
    %263 = vector.shape_cast %262 : vector<1x1x12x12xf32> to vector<1x12x12xf32>
    %264 = vector.shape_cast %261 : vector<1x12x12xf32> to vector<1x1x12x12xf32>
    tpu.vector_store %arg6[%c0_161, %c0_162, %c0_163, %c0_164], %264 {strides = array<i32>} : memref<1x10x12x12xf32, #tpu.memory_space<vmem>>, vector<1x1x12x12xf32>,
    %c0_165 = arith.constant 0 : index
    %c0_166 = arith.constant 0 : index
    %c12_167 = arith.constant 12 : index
    %265 = vector.load %arg8[%c0_165, %c0_166, %c12_167] : memref<1x12x120xf32, #tpu.memory_space<vmem>>, vector<1x12x12xf32>
    %c0_168 = arith.constant 0 : index
    %c1_169 = arith.constant 1 : index
    %c0_170 = arith.constant 0 : index
    %c0_171 = arith.constant 0 : index
    %266 = vector.load %arg6[%c0_168, %c1_169, %c0_170, %c0_171] : memref<1x10x12x12xf32, #tpu.memory_space<vmem>>, vector<1x1x12x12xf32>
    %267 = vector.shape_cast %266 : vector<1x1x12x12xf32> to vector<1x12x12xf32>
    %268 = vector.shape_cast %265 : vector<1x12x12xf32> to vector<1x1x12x12xf32>
    tpu.vector_store %arg6[%c0_168, %c1_169, %c0_170, %c0_171], %268 {strides = array<i32>} : memref<1x10x12x12xf32, #tpu.memory_space<vmem>>, vector<1x1x12x12xf32>,
    %c0_172 = arith.constant 0 : index
    %c0_173 = arith.constant 0 : index
    %c24_174 = arith.constant 24 : index
    %269 = vector.load %arg8[%c0_172, %c0_173, %c24_174] : memref<1x12x120xf32, #tpu.memory_space<vmem>>, vector<1x12x12xf32>
    %c0_175 = arith.constant 0 : index
    %c2_176 = arith.constant 2 : index
    %c0_177 = arith.constant 0 : index
    %c0_178 = arith.constant 0 : index
    %270 = vector.load %arg6[%c0_175, %c2_176, %c0_177, %c0_178] : memref<1x10x12x12xf32, #tpu.memory_space<vmem>>, vector<1x1x12x12xf32>
    %271 = vector.shape_cast %270 : vector<1x1x12x12xf32> to vector<1x12x12xf32>
    %272 = vector.shape_cast %269 : vector<1x12x12xf32> to vector<1x1x12x12xf32>
    tpu.vector_store %arg6[%c0_175, %c2_176, %c0_177, %c0_178], %272 {strides = array<i32>} : memref<1x10x12x12xf32, #tpu.memory_space<vmem>>, vector<1x1x12x12xf32>,
    %c0_179 = arith.constant 0 : index
    %c0_180 = arith.constant 0 : index
    %c36 = arith.constant 36 : index
    %273 = vector.load %arg8[%c0_179, %c0_180, %c36] : memref<1x12x120xf32, #tpu.memory_space<vmem>>, vector<1x12x12xf32>
    %c0_181 = arith.constant 0 : index
    %c3_182 = arith.constant 3 : index
    %c0_183 = arith.constant 0 : index
    %c0_184 = arith.constant 0 : index
    %274 = vector.load %arg6[%c0_181, %c3_182, %c0_183, %c0_184] : memref<1x10x12x12xf32, #tpu.memory_space<vmem>>, vector<1x1x12x12xf32>
    %275 = vector.shape_cast %274 : vector<1x1x12x12xf32> to vector<1x12x12xf32>
    %276 = vector.shape_cast %273 : vector<1x12x12xf32> to vector<1x1x12x12xf32>
    tpu.vector_store %arg6[%c0_181, %c3_182, %c0_183, %c0_184], %276 {strides = array<i32>} : memref<1x10x12x12xf32, #tpu.memory_space<vmem>>, vector<1x1x12x12xf32>,
    %c0_185 = arith.constant 0 : index
    %c0_186 = arith.constant 0 : index
    %c48 = arith.constant 48 : index
    %277 = vector.load %arg8[%c0_185, %c0_186, %c48] : memref<1x12x120xf32, #tpu.memory_space<vmem>>, vector<1x12x12xf32>
    %c0_187 = arith.constant 0 : index
    %c4_188 = arith.constant 4 : index
    %c0_189 = arith.constant 0 : index
    %c0_190 = arith.constant 0 : index
    %278 = vector.load %arg6[%c0_187, %c4_188, %c0_189, %c0_190] : memref<1x10x12x12xf32, #tpu.memory_space<vmem>>, vector<1x1x12x12xf32>
    %279 = vector.shape_cast %278 : vector<1x1x12x12xf32> to vector<1x12x12xf32>
    %280 = vector.shape_cast %277 : vector<1x12x12xf32> to vector<1x1x12x12xf32>
    tpu.vector_store %arg6[%c0_187, %c4_188, %c0_189, %c0_190], %280 {strides = array<i32>} : memref<1x10x12x12xf32, #tpu.memory_space<vmem>>, vector<1x1x12x12xf32>,
    %c0_191 = arith.constant 0 : index
    %c0_192 = arith.constant 0 : index
    %c60 = arith.constant 60 : index
    %281 = vector.load %arg8[%c0_191, %c0_192, %c60] : memref<1x12x120xf32, #tpu.memory_space<vmem>>, vector<1x12x12xf32>
    %c0_193 = arith.constant 0 : index
    %c5_194 = arith.constant 5 : index
    %c0_195 = arith.constant 0 : index
    %c0_196 = arith.constant 0 : index
    %282 = vector.load %arg6[%c0_193, %c5_194, %c0_195, %c0_196] : memref<1x10x12x12xf32, #tpu.memory_space<vmem>>, vector<1x1x12x12xf32>
    %283 = vector.shape_cast %282 : vector<1x1x12x12xf32> to vector<1x12x12xf32>
    %284 = vector.shape_cast %281 : vector<1x12x12xf32> to vector<1x1x12x12xf32>
    tpu.vector_store %arg6[%c0_193, %c5_194, %c0_195, %c0_196], %284 {strides = array<i32>} : memref<1x10x12x12xf32, #tpu.memory_space<vmem>>, vector<1x1x12x12xf32>,
    %c0_197 = arith.constant 0 : index
    %c0_198 = arith.constant 0 : index
    %c72 = arith.constant 72 : index
    %285 = vector.load %arg8[%c0_197, %c0_198, %c72] : memref<1x12x120xf32, #tpu.memory_space<vmem>>, vector<1x12x12xf32>
    %c0_199 = arith.constant 0 : index
    %c6_200 = arith.constant 6 : index
    %c0_201 = arith.constant 0 : index
    %c0_202 = arith.constant 0 : index
    %286 = vector.load %arg6[%c0_199, %c6_200, %c0_201, %c0_202] : memref<1x10x12x12xf32, #tpu.memory_space<vmem>>, vector<1x1x12x12xf32>
    %287 = vector.shape_cast %286 : vector<1x1x12x12xf32> to vector<1x12x12xf32>
    %288 = vector.shape_cast %285 : vector<1x12x12xf32> to vector<1x1x12x12xf32>
    tpu.vector_store %arg6[%c0_199, %c6_200, %c0_201, %c0_202], %288 {strides = array<i32>} : memref<1x10x12x12xf32, #tpu.memory_space<vmem>>, vector<1x1x12x12xf32>,
    %c0_203 = arith.constant 0 : index
    %c0_204 = arith.constant 0 : index
    %c84 = arith.constant 84 : index
    %289 = vector.load %arg8[%c0_203, %c0_204, %c84] : memref<1x12x120xf32, #tpu.memory_space<vmem>>, vector<1x12x12xf32>
    %c0_205 = arith.constant 0 : index
    %c7_206 = arith.constant 7 : index
    %c0_207 = arith.constant 0 : index
    %c0_208 = arith.constant 0 : index
    %290 = vector.load %arg6[%c0_205, %c7_206, %c0_207, %c0_208] : memref<1x10x12x12xf32, #tpu.memory_space<vmem>>, vector<1x1x12x12xf32>
    %291 = vector.shape_cast %290 : vector<1x1x12x12xf32> to vector<1x12x12xf32>
    %292 = vector.shape_cast %289 : vector<1x12x12xf32> to vector<1x1x12x12xf32>
    tpu.vector_store %arg6[%c0_205, %c7_206, %c0_207, %c0_208], %292 {strides = array<i32>} : memref<1x10x12x12xf32, #tpu.memory_space<vmem>>, vector<1x1x12x12xf32>,
    %c0_209 = arith.constant 0 : index
    %c0_210 = arith.constant 0 : index
    %c96 = arith.constant 96 : index
    %293 = vector.load %arg8[%c0_209, %c0_210, %c96] : memref<1x12x120xf32, #tpu.memory_space<vmem>>, vector<1x12x12xf32>
    %c0_211 = arith.constant 0 : index
    %c8_212 = arith.constant 8 : index
    %c0_213 = arith.constant 0 : index
    %c0_214 = arith.constant 0 : index
    %294 = vector.load %arg6[%c0_211, %c8_212, %c0_213, %c0_214] : memref<1x10x12x12xf32, #tpu.memory_space<vmem>>, vector<1x1x12x12xf32>
    %295 = vector.shape_cast %294 : vector<1x1x12x12xf32> to vector<1x12x12xf32>
    %296 = vector.shape_cast %293 : vector<1x12x12xf32> to vector<1x1x12x12xf32>
    tpu.vector_store %arg6[%c0_211, %c8_212, %c0_213, %c0_214], %296 {strides = array<i32>} : memref<1x10x12x12xf32, #tpu.memory_space<vmem>>, vector<1x1x12x12xf32>,
    %c0_215 = arith.constant 0 : index
    %c0_216 = arith.constant 0 : index
    %c108 = arith.constant 108 : index
    %297 = vector.load %arg8[%c0_215, %c0_216, %c108] : memref<1x12x120xf32, #tpu.memory_space<vmem>>, vector<1x12x12xf32>
    %c0_217 = arith.constant 0 : index
    %c9_218 = arith.constant 9 : index
    %c0_219 = arith.constant 0 : index
    %c0_220 = arith.constant 0 : index
    %298 = vector.load %arg6[%c0_217, %c9_218, %c0_219, %c0_220] : memref<1x10x12x12xf32, #tpu.memory_space<vmem>>, vector<1x1x12x12xf32>
    %299 = vector.shape_cast %298 : vector<1x1x12x12xf32> to vector<1x12x12xf32>
    %300 = vector.shape_cast %297 : vector<1x12x12xf32> to vector<1x1x12x12xf32>
    tpu.vector_store %arg6[%c0_217, %c9_218, %c0_219, %c0_220], %300 {strides = array<i32>} : memref<1x10x12x12xf32, #tpu.memory_space<vmem>>, vector<1x1x12x12xf32>,
    return
  }
  func.func @transform_0(%arg0: i32) -> (i32, i32, i32, i32) {
    %c0_i32 = arith.constant 0 : i32
    %c0_i32_0 = arith.constant 0 : i32
    %c0_i32_1 = arith.constant 0 : i32
    %c0_i32_2 = arith.constant 0 : i32
    return %arg0, %c0_i32, %c0_i32_0, %c0_i32_1 : i32, i32, i32, i32
  }
  func.func @transform_1(%arg0: i32) -> (i32, i32, i32) {
    %c0_i32 = arith.constant 0 : i32
    %c0_i32_0 = arith.constant 0 : i32
    %c0_i32_1 = arith.constant 0 : i32
    %c0_i32_2 = arith.constant 0 : i32
    return %c0_i32, %c0_i32_0, %c0_i32_1 : i32, i32, i32
  }
  func.func @transform_2(%arg0: i32) -> (i32, i32) {
    %c0_i32 = arith.constant 0 : i32
    %c0_i32_0 = arith.constant 0 : i32
    %c0_i32_1 = arith.constant 0 : i32
    return %c0_i32, %c0_i32_0 : i32, i32
  }
  func.func @transform_3(%arg0: i32) -> (i32, i32, i32) {
    %c0_i32 = arith.constant 0 : i32
    %c0_i32_0 = arith.constant 0 : i32
    %c0_i32_1 = arith.constant 0 : i32
    %c0_i32_2 = arith.constant 0 : i32
    return %c0_i32, %c0_i32_0, %c0_i32_1 : i32, i32, i32
  }
  func.func @transform_4(%arg0: i32) -> (i32, i32) {
    %c0_i32 = arith.constant 0 : i32
    %c0_i32_0 = arith.constant 0 : i32
    %c0_i32_1 = arith.constant 0 : i32
    return %c0_i32, %c0_i32_0 : i32, i32
  }
  func.func @transform_5(%arg0: i32) -> (i32, i32, i32, i32) {
    %c0_i32 = arith.constant 0 : i32
    %c0_i32_0 = arith.constant 0 : i32
    %c0_i32_1 = arith.constant 0 : i32
    %c0_i32_2 = arith.constant 0 : i32
    return %arg0, %c0_i32, %c0_i32_0, %c0_i32_1 : i32, i32, i32, i32
  }
}

</mosaic_0001>

<bundles_post_ra>
// kernel: transposed_conv_model.1
= control target key start
LH: loop header
LB: loop body
LE: loop exit
PB: predicated region body
PF: predicated region fallthrough
CT: control target
= control target key end

     0   :  { %10 = vsyncpa [#allocation5], 0  ;;  %s3621_s18 = smov 0   ;;  %s4032_s0 = inlined_call_operand.vmem [shape: f32[2,10,8,8], index: 0, kind: input, shape index: {}]   ;;  %s4033_s1 = inlined_call_operand.vmem [shape: f32[30,8,100], index: 1, kind: input, shape index: {}]   ;;  %s4034_s2 = inlined_call_operand.vmem [shape: f32[1,100], index: 2, kind: input, shape index: {}]   ;;  %s4035_s3 = inlined_call_operand.hbm [shape: f32[3,100,120], index: 3, kind: input, shape index: {}]   ;;  %s4036_s4 = inlined_call_operand.vmem [shape: f32[1,120], index: 4, kind: input, shape index: {}]   ;;  %s4037_s5 = inlined_call_operand.vmem [shape: f32[2,10,12,12], index: 5, kind: output, shape index: {}]  }
   0x1 LB: > { %s3627_s19 = sadd.s32 4294967295, %s3575_s18   ;;  %p2992_p0 = scmp.ge.s32.totalorder %s3575_s18, 1  ;;  %s3575_s18 = sphi %s3621_s18, %s16_s18  }
   0x2   : > { %p157_p1 = scmp.lt.s32.totalorder %s3575_s18, 3  ;;  %s3577_s20 = smov [#allocation4]  }
   0x3   : > { %s175_s21 = sshll.u32 %s3577_s20, 4  ;;  %p4038_p3 = scmp.eq.s32.totalorder %s3627_s19, 0  ;;  %s176_s21 = int_to_ptr.vmem [resolvable:$true] %s175_s21 }
   0x4   : > { %p3631_p2 = pnand %p2992_p0, %p157_p1  ;;  %s3537_s26 = scalar_lea.hbm %s4035_s3, 4992 }
   0x5   : > { %p3538_p6 = scmp.ne.s32.totalorder %s4035_s3, %s3537_s26  ;;  %p3544_p10 = scmp.lt.u32.totalorder %s3537_s26, %s4035_s3 }
   0x6   : > { %s4040_s22 = scalar_select %p3631_p2, 1, 0 }
   0x7   : > { %p3509_p4 = pneg %p3631_p2 }
   0x9   : > { %p3640_p5 = pnand %p4038_p3, %p3509_p4 }
   0xb   : > { %p3539_p7 = pneg %p3640_p5 }
   0xd   : > { %p3540_p8 = pnand %p3539_p7, %p3538_p6 }
   0xf   : > { %p3541_p9 = pneg %p3540_p8 }
  0x11   : > { %p3546_p11 = pnand %p3544_p10, %p3541_p9 }
  0x13   : > { %3549 = shalt.err (!%p3546_p11)
}
  0x14   : > { %s3550_s6 = scalar_lea.vmem %s176_s21, 4992  ;;  %p3558_p1 = scmp.lt.s32.totalorder %s176_s21, %s176_s21 }
  0x15   : > { %p3551_p12 = scmp.ne.s32.totalorder %s176_s21, %s3550_s6  ;;  %p3559_p4 = scmp.lt.s32.totalorder %s3550_s6, %s3550_s6 }
  0x17   : > { %p3553_p13 = pnand %p3551_p12, %p3539_p7  ;;  %p3560_p3 = por %p3559_p4, %p3558_p1 }
  0x19   : > { %p3554_p0 = pneg %p3553_p13 }
  0x1b   : > { %p3561_p2 = pnand %p3560_p3, %p3554_p0 }
  0x1d   : > { %3564 = shalt.err (!%p3561_p2)
}
  0x1e   : > { %s3578_s7 = smov 128   ;;  %s3579_s8 = smov 8  }
  0x1f   : > { %3512 = dma.hbm_to_vmem [thread:$0]  (!%p3640_p5), %s4035_s3, 4992, %s176_s21, [#allocation5], %s3578_s7, %s3578_s7, %s3579_s8  }
  0x20   : > { %p4042_p6 = scmp.ne.s32.totalorder %s4040_s22, 0 }
  0x21   : > { %p4043_p8 = scmp.eq.s32.totalorder (!%p4042_p6), %s3627_s19, 0 }
  0x22   : > { %202 = sbr.rel (%p4042_p6) target bundleno = 742 (0x2e6), region = 40 }
  0x29   : > { %3570 = dma.done.wait (%p4043_p8), [#allocation5], 4992   ;;  %p4044_p7 = pmov %p4043_p8 }
  0x2a   : > { %p230_p2 = scmp.lt.s32.totalorder %s3627_s19, 1  ;;  %v3580_v0 = vmov 0.0   ;;  %vm3581_vm0 = vmmov 0   ;;  %vm264_vm1 = vcmask 64512   ;;  %v3000_v1 = vld [vmem:[%s4033_s1 + $0x8] sm:$0xff]  ;;  %v261_v3 = vld [vmem:[%s4033_s1] sm:$0xff] }
  0x2b   : > { %3572 = vsyncadd (%p4044_p7), [#allocation5], 4294962304  ;;  %3194 = vmatprep.subr.mxu1 %v3580_v0  ;;  %3196 = vmatprep.mubr.msk.f32.mxu1 %vm3581_vm0, %v3580_v0  ;;  %v3003_v5 = vld [vmem:[%s4033_s1 + $0x10] sm:$0xff]  ;;  %v3015_v8 = vld [vmem:[%s4033_s1 + $0x40] sm:$0xff]  ;;  %vm257_vm2 = vcmask 818176   ;;  %vm259_vm3 = vcmask 812032  }
  0x2c   : > { %s4046_s19 = smov (!%p230_p2, %s3627_s19), 1  ;;  %3224 = vmatprep.subr.mxu0 %v3580_v0  ;;  %3226 = vmatprep.mubr.msk.f32.mxu0 %vm3581_vm0, %v3580_v0  ;;  %v3011_v6 = vld [vmem:[%s4033_s1 + $0x30] sm:$0xff]  ;;  %v3005_v11 = vld [vmem:[%s4033_s1 + $0x18] sm:$0xff]  ;;  %v3007_v14 = vld [vmem:[%s4033_s1 + $0x20] sm:$0xff]  ;;  %vm2518_vm4 = vcmask 1043456   ;;  %vm2497_vm5 = vcmask 977920  }
  0x2d   : > { %s3503_s11 = smul.u32 80, %s4046_s19  ;;  %3195 = vmatpush3.msra.mxu1 %v3000_v1  ;;  %3225 = vmatpush3.msra.mxu0 %v3011_v6  ;;  %v3020_v12 = vld [vmem:[%s4033_s1 + $0x58] sm:$0xff]  ;;  %v3023_v15 = vld [vmem:[%s4033_s1 + $0x60] sm:$0xff]  ;;  %v3009_v17 = vld [vmem:[%s4033_s1 + $0x28] sm:$0xff]  ;;  %vm2495_vm6 = vcmask 982016   ;;  %vm2602_vm7 = vcmask 975872  }
  0x2e   : > { %3199 = vmatprep.subr.mxu1 %v3580_v0  ;;  %3234 = vmatprep.subr.mxu0 %v3580_v0  ;;  %v3027_v18 = vld [vmem:[%s4033_s1 + $0x70] sm:$0xff]  ;;  %v3013_v20 = vld [vmem:[%s4033_s1 + $0x38] sm:$0xff]  ;;  %v3031_v21 = vld [vmem:[%s4033_s1 + $0x80] sm:$0xff]  ;;  %s3504_s10 = smul.u32 160, %s4046_s19  ;;  %vm2802_vm8 = vcmask 97280   ;;  %vm2804_vm9 = vcmask 93184  }
  0x2f   : > { %s3680_s14 = scalar_lea.vmem %s4032_s0, %s3503_s11  ;;  %v3017_v23 = vld [vmem:[%s4033_s1 + $0x48] sm:$0xff]  ;;  %v3035_v24 = vld [vmem:[%s4033_s1 + $0x90] sm:$0xff]  ;;  %v3029_v30 = vld [vmem:[%s4033_s1 + $0x78] sm:$0xff]  ;;  %s3582_s15 = smov 104  }
  0x30   : > { %v3686_v2 = vld [vmem:[%s3680_s14 + $0x8] sm:$0xff]  ;;  %v3697_v4 = vld [vmem:[%s3680_s14] sm:$0xff]  ;;  %v3707_v7 = vld [vmem:[%s3680_s14 + $0x30] sm:$0xff]  ;;  %s3987_s13 = scalar_lea.vmem %s4037_s5, %s3504_s10  ;;  %s3583_s16 = smov 116  }
  0x31   : > { %3197 = vmatmul.mubr.msk.f32.vlgmr.msra.gmra.mrb[0].mxu1 %vm264_vm1, %v3686_v2  ;;  %3227 = vmatmul.mubr.msk.f32.vlgmr.msra.gmra.mrb[0].mxu0 %vm264_vm1, %v3707_v7  ;;  %v3719_v9 = vld [vmem:[%s3680_s14 + $0x10] sm:$0xff]  ;;  %v3722_v10 = vld [vmem:[%s3680_s14 + $0x40] sm:$0xff]  ;;  %v3741_v13 = vld [vmem:[%s3680_s14 + $0x18] sm:$0xff]  ;;  %s3584_s19 = smov 92   ;;  %s3585_s17 = smov 80  }
  0x32   : > { %3200 = vmatpush3.msra.mxu1 %v261_v3  ;;  %3201 = vmatprep.mubr.msk.f32.mxu1 %vm3581_vm0, %v3580_v0  ;;  %v3760_v16 = vld [vmem:[%s3680_s14 + $0x20] sm:$0xff]  ;;  %v3779_v19 = vld [vmem:[%s3680_s14 + $0x28] sm:$0xff]  ;;  %v3798_v22 = vld [vmem:[%s3680_s14 + $0x38] sm:$0xff]  ;;  %s3586_s20 = smov 68   ;;  %s3587_s21 = smov 56  }
  0x33   : > { %3204 = vmatprep.subr.mxu1 %v3580_v0  ;;  %3235 = vmatpush3.msra.mxu0 %v3015_v8  ;;  %v3817_v25 = vld [vmem:[%s3680_s14 + $0x48] sm:$0xff]  ;;  %v3019_v26 = vld [vmem:[%s4033_s1 + $0x50] sm:$0xff]  ;;  %v3047_v31 = vld [vmem:[%s4033_s1 + $0xc0] sm:$0xff]  ;;  %s3588_s22 = smov 44   ;;  %s3589_s23 = smov 32  }
  0x34   : > { %3236 = vmatprep.mubr.msk.f32.mxu0 %vm3581_vm0, %v3580_v0  ;;  %3244 = vmatprep.subr.mxu0 %v3580_v0  ;;  %v3040_v27 = vld [vmem:[%s4033_s1 + $0xa8] sm:$0xff]  ;;  %v3043_v29 = vld [vmem:[%s4033_s1 + $0xb0] sm:$0xff]  ;;  %v3037_v34 = vld [vmem:[%s4033_s1 + $0x98] sm:$0xff]  ;;  %s3590_s24 = smov 20  }
  0x35   : > { %3202 = vmatmul.mubr.msk.f32.vlgmr.msra.gmra.mrb[2].mxu1 %vm264_vm1, %v3697_v4  ;;  %3237 = vmatmul.mubr.msk.f32.vlgmr.msra.gmra.mrb[2].mxu0 %vm264_vm1, %v3722_v10  ;;  %v3025_v28 = vld [vmem:[%s4033_s1 + $0x68] sm:$0xff]  ;;  %v3051_v33 = vld [vmem:[%s4033_s1 + $0xd0] sm:$0xff]  ;;  %v3055_v35 = vld [vmem:[%s4033_s1 + $0xe0] sm:$0xff] }
  0x36   : > { %3205 = vmatpush3.msra.mxu1 %v3003_v5  ;;  %3206 = vmatprep.mubr.msk.f32.mxu1 %vm3581_vm0, %v3580_v0  ;;  %v3033_v32 = vld [vmem:[%s4033_s1 + $0x88] sm:$0xff]  ;;  %v3039_v36 = vld [vmem:[%s4033_s1 + $0xa0] sm:$0xff]  ;;  %v3045_v37 = vld [vmem:[%s4033_s1 + $0xb8] sm:$0xff] }
  0x37   : > { %3209 = vmatprep.subr.mxu1 %v3580_v0  ;;  %3245 = vmatpush3.msra.mxu0 %v3020_v12  ;;  %v3049_v38 = vld [vmem:[%s4033_s1 + $0xc8] sm:$0xff]  ;;  %v3053_v39 = vld [vmem:[%s4033_s1 + $0xd8] sm:$0xff]  ;;  %v2999_v41 = vld [vmem:[%s4034_s2] ss:$0 sm:$0xff] }
  0x38   : > { %3246 = vmatprep.mubr.msk.f32.mxu0 %vm3581_vm0, %v3580_v0  ;;  %3254 = vmatprep.subr.mxu0 %v3580_v0  ;;  %v3057_v40 = vld [vmem:[%s4033_s1 + $0xe8] sm:$0xff]  ;;  %258 = vst.msk [vmem:[#allocation2] sm:$0xff] %vm257_vm2, %v2999_v41  ;;  %v2499_v42 = vld [vmem:[#allocation4] sm:$0xff]  ;;  %v2500_v43 = vld [vmem:[#allocation4 + $0x8] sm:$0xff] }
  0x39   : > { %3207 = vmatmul.mubr.msk.f32.vlgmr.msra.gmra.mrb[4].mxu1 %vm264_vm1, %v3719_v9  ;;  %3247 = vmatmul.mubr.msk.f32.vlgmr.msra.gmra.mrb[4].mxu0 %vm264_vm1, %v3686_v2  ;;  %260 = vst.msk [vmem:[#allocation2 + $0x8] sm:$0x3] %vm259_vm3, %v2999_v41  ;;  %v3431_v44 = vpack.c.bf16 %v2500_v43, %v2499_v42  ;;  %v2605_v45 = vld [vmem:[#allocation4 + $0x68] sm:$0xff]  ;;  %v2606_v46 = vld [vmem:[#allocation4 + $0x70] sm:$0xff]  ;;  %v2502_v49 = vld [vmem:[#allocation4 + $0x18] sm:$0xff] }
  0x3a   : > { %3210 = vmatpush3.msra.mxu1 %v3005_v11  ;;  %3211 = vmatprep.mubr.msk.f32.mxu1 %vm3581_vm0, %v3580_v0  ;;  %v3455_v47 = vpack.c.bf16 %v2606_v46, %v2605_v45  ;;  %v2501_v48 = vld [vmem:[#allocation4 + $0x10] sm:$0xff]  ;;  %v2607_v51 = vld [vmem:[#allocation4 + $0x78] sm:$0xff]  ;;  %v2608_v52 = vld [vmem:[#allocation4 + $0x80] sm:$0xff] }
  0x3b   : > { %3214 = vmatprep.subr.mxu1 %v3580_v0  ;;  %3255 = vmatpush3.msra.mxu0 %v3023_v15  ;;  %v3435_v50 = vpack.c.bf16 %v2502_v49, %v2501_v48  ;;  %v3459_v53 = vpack.c.bf16 %v2608_v52, %v2607_v51  ;;  %v2503_v54 = vld [vmem:[#allocation4 + $0x20] sm:$0xff]  ;;  %v2504_v55 = vld [vmem:[#allocation4 + $0x28] sm:$0xff]  ;;  %v2610_v58 = vld [vmem:[#allocation4 + $0x90] sm:$0xff] }
  0x3c   : > { %3256 = vmatprep.mubr.msk.f32.mxu0 %vm3581_vm0, %v3580_v0  ;;  %3264 = vmatprep.subr.mxu0 %v3580_v0  ;;  %v3439_v56 = vpack.c.bf16 %v2504_v55, %v2503_v54  ;;  %v2609_v57 = vld [vmem:[#allocation4 + $0x88] sm:$0xff]  ;;  %v2505_v60 = vld [vmem:[#allocation4 + $0x30] sm:$0xff]  ;;  %v2506_v61 = vld [vmem:[#allocation4 + $0x38] sm:$0xff] }
  0x3d   : > { %3212 = vmatmul.mubr.msk.f32.vlgmr.msra.gmra.mrb[6].mxu1 %vm264_vm1, %v3741_v13  ;;  %3257 = vmatmul.mubr.msk.f32.vlgmr.msra.gmra.mrb[6].mxu0 %vm264_vm1, %v3719_v9  ;;  %v3463_v59 = vpack.c.bf16 %v2610_v58, %v2609_v57  ;;  %v3443_v62 = vpack.c.bf16 %v2506_v61, %v2505_v60  ;;  %v2611_v63 = vld [vmem:[#allocation4 + $0x98] sm:$0xff]  ;;  %v2508_v3 = vld [vmem:[#allocation4 + $0x48] sm:$0xff]  ;;  %v2614_v6 = vld [vmem:[#allocation4 + $0xb0] sm:$0xff] }
  0x3e   : > { %3215 = vmatpush3.msra.mxu1 %v3007_v14  ;;  %3216 = vmatprep.mubr.msk.f32.mxu1 %vm3581_vm0, %v3580_v0  ;;  %v2613_v5 = vld [vmem:[#allocation4 + $0xa8] sm:$0xff]  ;;  %v2509_v8 = vld [vmem:[#allocation4 + $0x50] sm:$0xff]  ;;  %v2616_v12 = vld [vmem:[#allocation4 + $0xc0] sm:$0xff] }
  0x3f   : > { %3219 = vmatprep.subr.mxu1 %v3580_v0  ;;  %3265 = vmatpush3.msra.mxu0 %v3027_v18  ;;  %v2511_v14 = vld [vmem:[#allocation4 + $0x60] sm:$0xf]  ;;  %v2617_v15 = vld [vmem:[#allocation4 + $0xc8] sm:$0xf] }
  0x40   : > { %3266 = vmatprep.mubr.msk.f32.mxu0 %vm3581_vm0, %v3580_v0  ;;  %3274 = vmatprep.subr.mxu0 %v3580_v0  ;;  %v1019_v55 = vld [vmem:[#allocation2] sm:$0xff] }
  0x41   : > { %3217 = vmatmul.mubr.msk.f32.vlgmr.msra.gmra.mrb[8].mxu1 %vm264_vm1, %v3760_v16  ;;  %3267 = vmatmul.mubr.msk.f32.vlgmr.msra.gmra.mrb[8].mxu0 %vm264_vm1, %v3760_v16 }
  0x42   : > { %3220 = vmatpush3.msra.mxu1 %v3009_v17  ;;  %3221 = vmatprep.mubr.msk.f32.mxu1 %vm3581_vm0, %v3580_v0  ;;  %v2704_v17 = vld [vmem:[#allocation4 + $0xd8] sm:$0xff] }
  0x43   : > { %3229 = vmatprep.subr.mxu1 %v3580_v0  ;;  %3275 = vmatpush3.msra.mxu0 %v3031_v21 }
  0x44   : > { %3276 = vmatprep.mubr.msk.f32.mxu0 %vm3581_vm0, %v3580_v0  ;;  %3284 = vmatprep.subr.mxu0 %v3580_v0 }
  0x45   : > { %3222 = vmatmul.mubr.msk.f32.vlgmr.msra.gmra.mrb[10].mxu1 %vm264_vm1, %v3779_v19  ;;  %3277 = vmatmul.mubr.msk.f32.vlgmr.msra.gmra.mrb[10].mxu0 %vm264_vm1, %v3707_v7 }
  0x46   : > { %3230 = vmatpush3.msra.mxu1 %v3013_v20  ;;  %3231 = vmatprep.mubr.msk.f32.mxu1 %vm3581_vm0, %v3580_v0 }
  0x47   : > { %3239 = vmatprep.subr.mxu1 %v3580_v0  ;;  %3285 = vmatpush3.msra.mxu0 %v3035_v24 }
  0x48   : > { %3286 = vmatprep.mubr.msk.f32.mxu0 %vm3581_vm0, %v3580_v0  ;;  %3294 = vmatprep.subr.mxu0 %v3580_v0 }
  0x49   : > { %3232 = vmatmul.mubr.msk.f32.vlgmr.msra.gmra.mrb[12].mxu1 %vm264_vm1, %v3798_v22  ;;  %3287 = vmatmul.mubr.msk.f32.vlgmr.msra.gmra.mrb[12].mxu0 %vm264_vm1, %v3722_v10 }
  0x4a   : > { %3240 = vmatpush3.msra.mxu1 %v3017_v23  ;;  %3241 = vmatprep.mubr.msk.f32.mxu1 %vm3581_vm0, %v3580_v0 }
  0x4b   : > { %3249 = vmatprep.subr.mxu1 %v3580_v0  ;;  %3295 = vmatpush3.msra.mxu0 %v3040_v27 }
  0x4c   : > { %3296 = vmatprep.mubr.msk.f32.mxu0 %vm3581_vm0, %v3580_v0  ;;  %3304 = vmatprep.subr.mxu0 %v3580_v0 }
  0x4d   : > { %3242 = vmatmul.mubr.msk.f32.vlgmr.msra.gmra.mrb[14].mxu1 %vm264_vm1, %v3817_v25  ;;  %3297 = vmatmul.mubr.msk.f32.vlgmr.msra.gmra.mrb[14].mxu0 %vm264_vm1, %v3686_v2  ;;  %v2507_v2 = vld [vmem:[#allocation4 + $0x40] sm:$0xff] }
  0x4e   : > { %3250 = vmatpush3.msra.mxu1 %v3019_v26  ;;  %3251 = vmatprep.mubr.msk.f32.mxu1 %vm3581_vm0, %v3580_v0 }
  0x4f   : > { %3259 = vmatprep.subr.mxu1 %v3580_v0  ;;  %3305 = vmatpush3.msra.mxu0 %v3043_v29 }
  0x50   : > { %3306 = vmatprep.mubr.msk.f32.mxu0 %vm3581_vm0, %v3580_v0  ;;  %3314 = vmatprep.subr.mxu0 %v3580_v0 }
  0x51   : > { %3252 = vmatmul.mubr.msk.f32.vlgmr.msra.gmra.mrb[16].mxu1 %vm264_vm1, %v3697_v4  ;;  %3307 = vmatmul.mubr.msk.f32.vlgmr.msra.gmra.mrb[16].mxu0 %vm264_vm1, %v3719_v9  ;;  %v2510_v9 = vld [vmem:[#allocation4 + $0x58] sm:$0xff] }
  0x52   : > { %3260 = vmatpush3.msra.mxu1 %v3025_v28  ;;  %3261 = vmatprep.mubr.msk.f32.mxu1 %vm3581_vm0, %v3580_v0  ;;  %v3451_v11 = vpack.c.bf16 %v2510_v9, %v2509_v8 }
  0x53   : > { %3269 = vmatprep.subr.mxu1 %v3580_v0  ;;  %3315 = vmatpush3.msra.mxu0 %v3047_v31 }
  0x54   : > { %3316 = vmatprep.mubr.msk.f32.mxu0 %vm3581_vm0, %v3580_v0  ;;  %3324 = vmatprep.subr.mxu0 %v3580_v0 }
  0x55   : > { %3262 = vmatmul.mubr.msk.f32.vlgmr.msra.gmra.mrb[18].mxu1 %vm264_vm1, %v3741_v13  ;;  %3317 = vmatmul.mubr.msk.f32.vlgmr.msra.gmra.mrb[18].mxu0 %vm264_vm1, %v3760_v16  ;;  %v2703_v16 = vld [vmem:[#allocation4 + $0xd0] sm:$0xff] }
  0x56   : > { %3270 = vmatpush3.msra.mxu1 %v3029_v30  ;;  %3271 = vmatprep.mubr.msk.f32.mxu1 %vm3581_vm0, %v3580_v0  ;;  %v3952_v18 = vpack.c.bf16 %v2704_v17, %v2703_v16 }
  0x57   : > { %3279 = vmatprep.subr.mxu1 %v3580_v0  ;;  %3325 = vmatpush3.msra.mxu0 %v3051_v33 }
  0x58   : > { %3326 = vmatprep.mubr.msk.f32.mxu0 %vm3581_vm0, %v3580_v0  ;;  %3334 = vmatprep.subr.mxu0 %v3580_v0 }
  0x59   : > { %3272 = vmatmul.mubr.msk.f32.vlgmr.msra.gmra.mrb[20].mxu1 %vm264_vm1, %v3779_v19  ;;  %3327 = vmatmul.mubr.msk.f32.vlgmr.msra.gmra.mrb[20].mxu0 %vm264_vm1, %v3707_v7  ;;  %v3471_v7 = vpack.c.bf16 %v2614_v6, %v2613_v5 }
  0x5a   : > { %3280 = vmatpush3.msra.mxu1 %v3033_v32  ;;  %3281 = vmatprep.mubr.msk.f32.mxu1 %vm3581_vm0, %v3580_v0 }
  0x5b   : > { %3289 = vmatprep.subr.mxu1 %v3580_v0  ;;  %3335 = vmatpush3.msra.mxu0 %v3055_v35 }
  0x5c   : > { %3336 = vmatprep.mubr.msk.f32.mxu0 %vm3581_vm0, %v3580_v0  ;;  %3432 = vmatprep.subr.bf16.mxu0 %v3431_v44 }
  0x5d   : > { %3282 = vmatmul.mubr.msk.f32.vlgmr.msra.gmra.mrb[22].mxu1 %vm264_vm1, %v3798_v22  ;;  %3337 = vmatmul.mubr.msk.f32.vlgmr.msra.gmra.mrb[22].mxu0 %vm264_vm1, %v3722_v10  ;;  %v2615_v10 = vld [vmem:[#allocation4 + $0xb8] sm:$0xff] }
  0x5e   : > { %3290 = vmatpush3.msra.mxu1 %v3037_v34  ;;  %3291 = vmatprep.mubr.msk.f32.mxu1 %vm3581_vm0, %v3580_v0 }
  0x5f   : > { %3299 = vmatprep.subr.mxu1 %v3580_v0  ;;  %3434 = vmatpush3.bf16.msra.mxu0 %v3431_v44 }
  0x60   : > { %3436 = vmatprep.subr.bf16.mxu0 %v3435_v50 }
  0x61   : > { %3292 = vmatmul.mubr.msk.f32.vlgmr.msra.gmra.mrb[24].mxu1 %vm264_vm1, %v3817_v25 }
  0x62   : > { %3300 = vmatpush3.msra.mxu1 %v3039_v36  ;;  %3301 = vmatprep.mubr.msk.f32.mxu1 %vm3581_vm0, %v3580_v0 }
  0x63   : > { %3309 = vmatprep.subr.mxu1 %v3580_v0  ;;  %3438 = vmatpush3.bf16.msra.mxu0 %v3435_v50 }
  0x64   : > { %3440 = vmatprep.subr.bf16.mxu0 %v3439_v56 }
  0x65   : > { %3302 = vmatmul.mubr.msk.f32.vlgmr.msra.gmra.mrb[26].mxu1 %vm264_vm1, %v3697_v4  ;;  %v3447_v4 = vpack.c.bf16 %v2508_v3, %v2507_v2 }
  0x66   : > { %3310 = vmatpush3.msra.mxu1 %v3045_v37  ;;  %3311 = vmatprep.mubr.msk.f32.mxu1 %vm3581_vm0, %v3580_v0 }
  0x67   : > { %3319 = vmatprep.subr.mxu1 %v3580_v0  ;;  %3442 = vmatpush3.bf16.msra.mxu0 %v3439_v56 }
  0x68   : > { %3444 = vmatprep.subr.bf16.mxu0 %v3443_v62 }
  0x69   : > { %3312 = vmatmul.mubr.msk.f32.vlgmr.msra.gmra.mrb[28].mxu1 %vm264_vm1, %v3741_v13  ;;  %v3475_v13 = vpack.c.bf16 %v2616_v12, %v2615_v10 }
  0x6a   : > { %3320 = vmatpush3.msra.mxu1 %v3049_v38  ;;  %3321 = vmatprep.mubr.msk.f32.mxu1 %vm3581_vm0, %v3580_v0 }
  0x6b   : > { %3329 = vmatprep.subr.mxu1 %v3580_v0  ;;  %3446 = vmatpush3.bf16.msra.mxu0 %v3443_v62 }
  0x6c   : > { %3448 = vmatprep.subr.bf16.mxu0 %v3447_v4 }
  0x6d   : > { %3322 = vmatmul.mubr.msk.f32.vlgmr.msra.gmra.mrb[30].mxu1 %vm264_vm1, %v3779_v19  ;;  %v3960_v19 = vld [vmem:[%s4036_s4] ss:$0 sm:$0xff] }
  0x6e   : > { %3330 = vmatpush3.msra.mxu1 %v3053_v39  ;;  %3331 = vmatprep.mubr.msk.f32.mxu1 %vm3581_vm0, %v3580_v0  ;;  %2498 = vst.msk [vmem:[#allocation3 + $0x8] sm:$0xf] %vm2497_vm5, %v3960_v19 }
  0x6f   : > { %3339 = vmatprep.subr.mxu1 %v3580_v0  ;;  %3450 = vmatpush3.bf16.msra.mxu0 %v3447_v4  ;;  %2496 = vst.msk [vmem:[#allocation3] sm:$0xff] %vm2495_vm6, %v3960_v19 }
  0x70   : > { %3452 = vmatprep.subr.bf16.mxu0 %v3451_v11 }
  0x71   : > { %3332 = vmatmul.mubr.msk.f32.vlgmr.msra.gmra.mrb[32].mxu1 %vm264_vm1, %v3798_v22 }
  0x72   : > { %3340 = vmatpush3.msra.mxu1 %v3057_v40  ;;  %3341 = vmatprep.mubr.msk.f32.mxu1 %vm3581_vm0, %v3580_v0  ;;  %v2612_v0 = vld [vmem:[#allocation4 + $0xa0] sm:$0xff] }
  0x73   : > { %3456 = vmatprep.subr.bf16.mxu1 %v3455_v47  ;;  %v3467_v1 = vpack.c.bf16 %v2612_v0, %v2611_v63  ;;  %3454 = vmatpush3.bf16.msra.mxu0 %v3451_v11 }
  0x74   : > { %3368 = vmatprep.subr.msk.mxu0 %vm2518_vm4, %v2511_v14 }
  0x75   : > { %3342 = vmatmul.mubr.msk.f32.vlgmr.msra.gmra.mrb[34].mxu1 %vm264_vm1, %v3817_v25 }
  0x76   : > { %3458 = vmatpush3.bf16.msra.mxu1 %v3455_v47 }
  0x77   : > { %3460 = vmatprep.subr.bf16.mxu1 %v3459_v53  ;;  %3369 = vmatpush3.msk.msra.mxu0 %vm2518_vm4, %v2511_v14 }
  0x78   : > { %3480 = vmatprep.subr.bf16.mxu0 %v3952_v18 }
  0x7a   : > { %3462 = vmatpush3.bf16.msra.mxu1 %v3459_v53 }
  0x7b   : > { %3464 = vmatprep.subr.bf16.mxu1 %v3463_v59 }
  0x7e   : > { %3466 = vmatpush3.bf16.msra.mxu1 %v3463_v59 }
  0x7f   : > { %3468 = vmatprep.subr.bf16.mxu1 %v3467_v1 }
  0x82   : > { %3470 = vmatpush3.bf16.msra.mxu1 %v3467_v1 }
  0x83   : > { %3472 = vmatprep.subr.bf16.mxu1 %v3471_v7 }
  0x86   : > { %3474 = vmatpush3.bf16.msra.mxu1 %v3471_v7 }
  0x87   : > { %3476 = vmatprep.subr.bf16.mxu1 %v3475_v13 }
  0x8a   : > { %3478 = vmatpush3.bf16.msra.mxu1 %v3475_v13 }
  0x8b   : > { %3397 = vmatprep.subr.msk.mxu1 %vm2518_vm4, %v2617_v15 }
  0x8e   : > { %3398 = vmatpush3.msk.msra.mxu1 %vm2518_vm4, %v2617_v15 }
 0x104   : > { %v334_v20 = vpop.f32.mrb[0].mxu1  ;;  %v786_v23 = vpop.f32.mrb[0].mxu0 }
 0x105   : > { %v3198_v21 = vpop.f32.mrb[1].mxu1  ;;  %v3228_v26 = vpop.f32.mrb[1].mxu0 }
 0x108   : > { %v407_v22 = vpop.f32.mrb[2].mxu1  ;;  %v938_v28 = vpop.f32.mrb[2].mxu0 }
 0x109   : > { %v408_v24 = vadd.f32 %v407_v22, %v334_v20  ;;  %v3203_v25 = vpop.f32.mrb[3].mxu1  ;;  %v3238_v31 = vpop.f32.mrb[3].mxu0 }
 0x10c   : > { %v482_v27 = vpop.f32.mrb[4].mxu1  ;;  %v1092_v33 = vpop.f32.mrb[4].mxu0 }
 0x10d   : > { %v486_v29 = vadd.f32 %v482_v27, %v408_v24  ;;  %v3208_v30 = vpop.f32.mrb[5].mxu1  ;;  %v3248_v36 = vpop.f32.mrb[5].mxu0 }
 0x110   : > { %v558_v32 = vpop.f32.mrb[6].mxu1  ;;  %v1234_v38 = vpop.f32.mrb[6].mxu0 }
 0x111   : > { %v562_v34 = vadd.f32 %v558_v32, %v486_v29  ;;  %v3213_v35 = vpop.f32.mrb[7].mxu1  ;;  %v3258_v41 = vpop.f32.mrb[7].mxu0 }
 0x114   : > { %v634_v37 = vpop.f32.mrb[8].mxu1  ;;  %v1380_v43 = vpop.f32.mrb[8].mxu0 }
 0x115   : > { %v638_v39 = vadd.f32 %v634_v37, %v562_v34  ;;  %v3218_v40 = vpop.f32.mrb[9].mxu1  ;;  %v3268_v46 = vpop.f32.mrb[9].mxu0 }
 0x118   : > { %v710_v42 = vpop.f32.mrb[10].mxu1  ;;  %v1526_v49 = vpop.f32.mrb[10].mxu0 }
 0x119   : > { %v714_v44 = vadd.f32 %v710_v42, %v638_v39  ;;  %v3223_v45 = vpop.f32.mrb[11].mxu1  ;;  %v3278_v52 = vpop.f32.mrb[11].mxu0 }
 0x11a   : > { %v2706_v52 = vld [vmem:[#allocation4 + $0xe8] sm:$0xff] }
 0x11b   : > { %v790_v47 = vadd.f32 %v786_v23, %v714_v44 }
 0x11c   : > { %v862_v48 = vpop.f32.mrb[12].mxu1  ;;  %v1672_v56 = vpop.f32.mrb[12].mxu0 }
 0x11d   : > { %v866_v50 = vadd.f32 %v862_v48, %v790_v47  ;;  %v3233_v51 = vpop.f32.mrb[13].mxu1  ;;  %v3288_v59 = vpop.f32.mrb[13].mxu0 }
 0x11e   : > { %v2705_v51 = vld [vmem:[#allocation4 + $0xe0] sm:$0xff]  ;;  %v2708_v59 = vld [vmem:[#allocation4 + $0xf8] sm:$0xff] }
 0x11f   : > { %v942_v53 = vadd.f32 %v938_v28, %v866_v50 }
 0x120   : > { %v1014_v54 = vpop.f32.mrb[14].mxu1  ;;  %v1823_v62 = vpop.f32.mrb[14].mxu0 }
 0x121   : > { %v1018_v57 = vadd.f32 %v1014_v54, %v942_v53  ;;  %v3243_v58 = vpop.f32.mrb[15].mxu1  ;;  %v3298_v1 = vpop.f32.mrb[15].mxu0 }
 0x122   : > { %v2707_v58 = vld [vmem:[#allocation4 + $0xf0] sm:$0xff]  ;;  %v2712_v1 = vld [vmem:[#allocation4 + $0x118] sm:$0xff] }
 0x123   : > { %v1020_v60 = vadd.f32 %v1019_v55, %v1018_v57  ;;  %v3483_v57 = vpack.c.bf16 %v2706_v52, %v2705_v51 }
 0x124   : > { %v1162_v61 = vpop.f32.mrb[16].mxu1  ;;  %v1965_v4 = vpop.f32.mrb[16].mxu0 }
 0x125   : > { %1021 = vst.msk [vmem:[#allocation2] sm:$0xff] %vm257_vm2, %v1020_v60  ;;  %v1163_v63 = vadd.f32 %v1162_v61, %v1092_v33  ;;  %v3253_v0 = vpop.f32.mrb[17].mxu1  ;;  %v3308_v7 = vpop.f32.mrb[17].mxu0  ;;  %v3487_v60 = vpack.c.bf16 %v2708_v59, %v2707_v58  ;;  %v2709_v61 = vld [vmem:[#allocation4 + $0x100] sm:$0xff] }
 0x126   : > { %v2711_v0 = vld [vmem:[#allocation4 + $0x110] sm:$0xff] }
 0x127   : > { %v1238_v2 = vadd.f32 %v1234_v38, %v1163_v63  ;;  %v2597_v7 = vld [vmem:[#allocation3] sm:$0xff] }
 0x128   : > { %v1307_v3 = vpop.f32.mrb[18].mxu1  ;;  %v2111_v10 = vpop.f32.mrb[18].mxu0 }
 0x129   : > { %v1311_v5 = vadd.f32 %v1307_v3, %v1238_v2  ;;  %v3263_v6 = vpop.f32.mrb[19].mxu1  ;;  %v3318_v13 = vpop.f32.mrb[19].mxu0  ;;  %v3495_v2 = vpack.c.bf16 %v2712_v1, %v2711_v0  ;;  %v2713_v3 = vld [vmem:[#allocation4 + $0x120] sm:$0xff] }
 0x12a   : > { %v2598_v6 = vld [vmem:[#allocation3 + $0x8] sm:$0x3] }
 0x12b   : > { %v1384_v8 = vadd.f32 %v1380_v43, %v1311_v5 }
 0x12c   : > { %v1453_v9 = vpop.f32.mrb[20].mxu1  ;;  %v2257_v16 = vpop.f32.mrb[20].mxu0  ;;  %v1750_v28 = vld [vmem:[#allocation2 + $0x1] sm:$0xff] }
 0x12d   : > { %v1457_v11 = vadd.f32 %v1453_v9, %v1384_v8  ;;  %v3273_v12 = vpop.f32.mrb[21].mxu1  ;;  %v3328_v21 = vpop.f32.mrb[21].mxu0 }
 0x12f   : > { %v1530_v14 = vadd.f32 %v1526_v49, %v1457_v11 }
 0x130   : > { %v1599_v15 = vpop.f32.mrb[22].mxu1  ;;  %v2403_v24 = vpop.f32.mrb[22].mxu0 }
 0x131   : > { %v1603_v17 = vadd.f32 %v1599_v15, %v1530_v14  ;;  %v3283_v20 = vpop.f32.mrb[23].mxu1  ;;  %v3338_v27 = vpop.f32.mrb[23].mxu0 }
 0x133   : > { %v1676_v22 = vadd.f32 %v1672_v56, %v1603_v17 }
 0x134   : > { %v1745_v23 = vpop.f32.mrb[24].mxu1 }
 0x135   : > { %v1749_v25 = vadd.f32 %v1745_v23, %v1676_v22  ;;  %v3293_v26 = vpop.f32.mrb[25].mxu1 }
 0x137   : > { %v1751_v29 = vadd.f32 %v1750_v28, %v1749_v25 }
 0x138   : > { %v1893_v30 = vpop.f32.mrb[26].mxu1 }
 0x139   : > { %1752 = vst.msk [vmem:[#allocation2 + $0x1] sm:$0xff] %vm257_vm2, %v1751_v29  ;;  %v1894_v31 = vadd.f32 %v1893_v30, %v1823_v62  ;;  %v3303_v32 = vpop.f32.mrb[27].mxu1  ;;  %v2710_v62 = vld [vmem:[#allocation4 + $0x108] sm:$0xff] }
 0x13a   : > { %v3491_v63 = vpack.c.bf16 %v2710_v62, %v2709_v61 }
 0x13b   : > { %v1969_v33 = vadd.f32 %v1965_v4, %v1894_v31  ;;  %v2714_v4 = vld [vmem:[#allocation4 + $0x128] sm:$0xff] }
 0x13c   : > { %v2038_v34 = vpop.f32.mrb[28].mxu1  ;;  %v3499_v5 = vpack.c.bf16 %v2714_v4, %v2713_v3 }
 0x13d   : > { %v2042_v35 = vadd.f32 %v2038_v34, %v1969_v33  ;;  %v3313_v36 = vpop.f32.mrb[29].mxu1 }
 0x13f   : > { %v2115_v37 = vadd.f32 %v2111_v10, %v2042_v35 }
 0x140   : > { %v2184_v38 = vpop.f32.mrb[30].mxu1  ;;  %v2481_v49 = vld [vmem:[#allocation2 + $0x2] sm:$0xff] }
 0x141   : > { %v2188_v39 = vadd.f32 %v2184_v38, %v2115_v37  ;;  %v3323_v40 = vpop.f32.mrb[31].mxu1 }
 0x143   : > { %v2261_v41 = vadd.f32 %v2257_v16, %v2188_v39 }
 0x144   : > { %v2330_v42 = vpop.f32.mrb[32].mxu1 }
 0x145   : > { %v2334_v43 = vadd.f32 %v2330_v42, %v2261_v41  ;;  %v3333_v44 = vpop.f32.mrb[33].mxu1 }
 0x147   : > { %v2407_v45 = vadd.f32 %v2403_v24, %v2334_v43 }
 0x148   : > { %v2476_v46 = vpop.f32.mrb[34].mxu1 }
 0x149   : > { %v2480_v47 = vadd.f32 %v2476_v46, %v2407_v45  ;;  %v3343_v48 = vpop.f32.mrb[35].mxu1 }
 0x14b   : > { %v2482_v50 = vadd.f32 %v2481_v49, %v2480_v47 }
 0x14d   : > { %2483 = vst.msk [vmem:[#allocation2 + $0x2] sm:$0xff] %vm257_vm2, %v2482_v50 }
 0x154   : > { %v2484_v53 = vld [vmem:[#allocation2] sm:$0xff]  ;;  %v2485_v54 = vld [vmem:[#allocation2 + $0x8] sm:$0x3] }
 0x155   : > { %v2486_v55 = vmax.f32 %v2484_v53, 0.0  ;;  %v2487_v56 = vmax.f32 %v2485_v54, 0.0 }
 0x157   : > { %3370 = vmatprep.mubr.msk.f32.mxu0 %vm257_vm2, %v2486_v55  ;;  %3399 = vmatprep.mubr.msk.f32.mxu1 %vm257_vm2, %v2486_v55 }
 0x158   : > { %3371 = vmatmul.mubr.msk.f32.vlgmr.msra.gmra.mrb[24].mxu0 %vm257_vm2, %v2487_v56  ;;  %3400 = vmatmul.mubr.msk.f32.vlgmr.msra.gmra.mrb[36].mxu1 %vm257_vm2, %v2487_v56 }
 0x159   : > { %3482 = vmatpush3.bf16.msra.mxu0 %v3952_v18  ;;  %3428 = vmatprep.mubr.msk.f32.mxu0 %vm257_vm2, %v2486_v55  ;;  %v2715_v18 = vld [vmem:[#allocation4 + $0x130] sm:$0xf] }
 0x15a   : > { %3484 = vmatprep.subr.bf16.mxu0 %v3483_v57 }
 0x15d   : > { %3486 = vmatpush3.bf16.msra.mxu0 %v3483_v57 }
 0x15e   : > { %3488 = vmatprep.subr.bf16.mxu0 %v3487_v60 }
 0x161   : > { %3490 = vmatpush3.bf16.msra.mxu0 %v3487_v60 }
 0x162   : > { %3492 = vmatprep.subr.bf16.mxu0 %v3491_v63 }
 0x165   : > { %3494 = vmatpush3.bf16.msra.mxu0 %v3491_v63 }
 0x166   : > { %3496 = vmatprep.subr.bf16.mxu0 %v3495_v2 }
 0x169   : > { %3498 = vmatpush3.bf16.msra.mxu0 %v3495_v2 }
 0x16a   : > { %3500 = vmatprep.subr.bf16.mxu0 %v3499_v5 }
 0x16d   : > { %3502 = vmatpush3.bf16.msra.mxu0 %v3499_v5 }
 0x16e   : > { %3426 = vmatprep.subr.msk.mxu0 %vm2518_vm4, %v2715_v18 }
 0x171   : > { %3427 = vmatpush3.msk.msra.mxu0 %vm2518_vm4, %v2715_v18 }
 0x172   : > { %3429 = vmatmul.mubr.msk.f32.vlgmr.msra.gmra.mrb[26].mxu0 %vm257_vm2, %v2487_v56 }
 0x22b   : > { %v3372_v8 = vpop.f32.mrb[24].mxu0  ;;  %v3401_v9 = vpop.f32.mrb[36].mxu1 }
 0x22c   : > { %v2600_v10 = vadd.f32 %v3372_v8, %v2598_v6  ;;  %v2588_v11 = vpop.f32.mrb[25].mxu0  ;;  %v2687_v12 = vpop.f32.mrb[37].mxu1 }
 0x22d   : > { %v2599_v13 = vadd.f32 %v2597_v7, %v2588_v11 }
 0x22e   : > { %2603 = vst.msk [vmem:[#allocation3 + $0x8] sm:$0x3] %vm2602_vm7, %v2600_v10 }
 0x22f   : > { %2601 = vst.msk [vmem:[#allocation3] sm:$0xff] %vm2495_vm6, %v2599_v13 }
 0x235   : > { %v2697_v14 = vld [vmem:[#allocation3 + $0x9] sm:$0x3] }
 0x236   : > { %v2699_v15 = vadd.f32 %v3401_v9, %v2697_v14  ;;  %v2696_v16 = vld [vmem:[#allocation3 + $0x1] sm:$0xff] }
 0x237   : > { %v2698_v17 = vadd.f32 %v2696_v16, %v2687_v12 }
 0x238   : > { %2701 = vst.msk [vmem:[#allocation3 + $0x9] sm:$0x3] %vm2602_vm7, %v2699_v15 }
 0x239   : > { %2700 = vst.msk [vmem:[#allocation3 + $0x1] sm:$0xff] %vm2495_vm6, %v2698_v17 }
 0x23f   : > { %v2795_v20 = vld [vmem:[#allocation3 + $0xa] sm:$0x3] }
 0x240   : > { %v2794_v23 = vld [vmem:[#allocation3 + $0x2] sm:$0xff] }
 0x245   : > { %v3430_v19 = vpop.f32.mrb[26].mxu0 }
 0x246   : > { %v2797_v21 = vadd.f32 %v3430_v19, %v2795_v20  ;;  %v2785_v22 = vpop.f32.mrb[27].mxu0 }
 0x247   : > { %v2796_v24 = vadd.f32 %v2794_v23, %v2785_v22 }
 0x248   : > { %2799 = vst.msk [vmem:[#allocation3 + $0xa] sm:$0x3] %vm2602_vm7, %v2797_v21 }
 0x249   : > { %2798 = vst.msk [vmem:[#allocation3 + $0x2] sm:$0xff] %vm2495_vm6, %v2796_v24 }
 0x250   : > { %v2800_v25 = vld [vmem:[#allocation3] sm:$0xff]  ;;  %v2801_v26 = vld [vmem:[#allocation3 + $0x8] sm:$0xf] }
 0x251   : > { %2823 = vrot.lane.b32.xlu1 %v2800_v25, %s3582_s15  ;;  %2810 = vrot.lane.b32.xlu0 %v2800_v25, %s3583_s16  ;;  %2803 = vst.msk [vmem:[%s3987_s13] sm:$0xff] %vm2802_vm8, %v2800_v25  ;;  %v2820_v27 = vld [vmem:[#allocation3 + $0x8] sm:$0xf] }
 0x252   : > { %2805 = vst.msk [vmem:[%s3987_s13 + $0x8] sm:$0xf] %vm2804_vm9, %v2801_v26  ;;  %v2807_v28 = vld [vmem:[#allocation3 + $0x8] sm:$0xf] }
 0x253   : > { %v2833_v29 = vld [vmem:[#allocation3 + $0x8] sm:$0xf] }
 0x254   : > { %v2846_v30 = vld [vmem:[#allocation3 + $0x8] sm:$0xf] }
 0x255   : > { %2825 = vrot.lane.b32.xlu1 %v2820_v27, %s3582_s15  ;;  %2812 = vrot.lane.b32.xlu0 %v2807_v28, %s3583_s16  ;;  %v2859_v31 = vld [vmem:[#allocation3 + $0x8] sm:$0xf] }
 0x256   : > { %v2872_v32 = vld [vmem:[#allocation3 + $0x8] sm:$0xf] }
 0x257   : > { %v2885_v33 = vld [vmem:[#allocation3 + $0x8] sm:$0xf] }
 0x258   : > { %v2898_v34 = vld [vmem:[#allocation3 + $0x8] sm:$0xf] }
 0x259   : > { %2838 = vrot.lane.b32.xlu1 %v2833_v29, %s3584_s19  ;;  %2836 = vrot.lane.b32.xlu0 %v2800_v25, %s3584_s19  ;;  %v2911_v35 = vld [vmem:[#allocation3 + $0x8] sm:$0xf] }
 0x25d   : > { %2851 = vrot.lane.b32.xlu1 %v2846_v30, %s3585_s17  ;;  %2849 = vrot.lane.b32.xlu0 %v2800_v25, %s3585_s17 }
 0x261   : > { %2864 = vrot.lane.b32.xlu1 %v2859_v31, %s3586_s20  ;;  %2862 = vrot.lane.b32.xlu0 %v2800_v25, %s3586_s20 }
 0x265   : > { %2877 = vrot.lane.b32.xlu1 %v2872_v32, %s3587_s21  ;;  %2875 = vrot.lane.b32.xlu0 %v2800_v25, %s3587_s21 }
 0x269   : > { %2890 = vrot.lane.b32.xlu1 %v2885_v33, %s3588_s22  ;;  %2888 = vrot.lane.b32.xlu0 %v2800_v25, %s3588_s22 }
 0x26d   : > { %2903 = vrot.lane.b32.xlu1 %v2898_v34, %s3589_s23  ;;  %2901 = vrot.lane.b32.xlu0 %v2800_v25, %s3589_s23 }
 0x271   : > { %2916 = vrot.lane.b32.xlu1 %v2911_v35, %s3590_s24  ;;  %2914 = vrot.lane.b32.xlu0 %v2800_v25, %s3590_s24 }
 0x2c3   : > { %v2824_v36 = vpop.permute.xlu1 %2823  ;;  %v2811_v37 = vpop.permute.xlu0 %2810 }
 0x2c4   : > { %3071 = vst.msk [vmem:[%s3987_s13 + $0x20] sm:$0xff] %vm2802_vm8, %v2824_v36  ;;  %3069 = vst.msk [vmem:[%s3987_s13 + $0x10] sm:$0xff] %vm2802_vm8, %v2811_v37 }
 0x2c7   : > { %v2826_v38 = vpop.permute.xlu1 %2825  ;;  %v2813_v39 = vpop.permute.xlu0 %2812 }
 0x2c8   : > { %3072 = vst.msk [vmem:[%s3987_s13 + $0x28] sm:$0xf] %vm2804_vm9, %v2826_v38  ;;  %3070 = vst.msk [vmem:[%s3987_s13 + $0x18] sm:$0xf] %vm2804_vm9, %v2813_v39 }
 0x2cb   : > { %v2839_v40 = vpop.permute.xlu1 %2838  ;;  %v2837_v41 = vpop.permute.xlu0 %2836 }
 0x2cc   : > { %3074 = vst.msk [vmem:[%s3987_s13 + $0x38] sm:$0xf] %vm2804_vm9, %v2839_v40 }
 0x2cd   : > { %3073 = vst.msk [vmem:[%s3987_s13 + $0x30] sm:$0xff] %vm2802_vm8, %v2837_v41 }
 0x2cf   : > { %v2852_v42 = vpop.permute.xlu1 %2851  ;;  %v2850_v43 = vpop.permute.xlu0 %2849 }
 0x2d0   : > { %3076 = vst.msk [vmem:[%s3987_s13 + $0x48] sm:$0xf] %vm2804_vm9, %v2852_v42 }
 0x2d1   : > { %3075 = vst.msk [vmem:[%s3987_s13 + $0x40] sm:$0xff] %vm2802_vm8, %v2850_v43 }
 0x2d3   : > { %v2865_v44 = vpop.permute.xlu1 %2864  ;;  %v2863_v45 = vpop.permute.xlu0 %2862 }
 0x2d4   : > { %3078 = vst.msk [vmem:[%s3987_s13 + $0x58] sm:$0xf] %vm2804_vm9, %v2865_v44 }
 0x2d5   : > { %3077 = vst.msk [vmem:[%s3987_s13 + $0x50] sm:$0xff] %vm2802_vm8, %v2863_v45 }
 0x2d7   : > { %v2878_v46 = vpop.permute.xlu1 %2877  ;;  %v2876_v47 = vpop.permute.xlu0 %2875 }
 0x2d8   : > { %3080 = vst.msk [vmem:[%s3987_s13 + $0x68] sm:$0xf] %vm2804_vm9, %v2878_v46 }
 0x2d9   : > { %3079 = vst.msk [vmem:[%s3987_s13 + $0x60] sm:$0xff] %vm2802_vm8, %v2876_v47 }
 0x2db   : > { %v2891_v48 = vpop.permute.xlu1 %2890  ;;  %v2889_v49 = vpop.permute.xlu0 %2888 }
 0x2dc   : > { %3082 = vst.msk [vmem:[%s3987_s13 + $0x78] sm:$0xf] %vm2804_vm9, %v2891_v48 }
 0x2dd   : > { %3081 = vst.msk [vmem:[%s3987_s13 + $0x70] sm:$0xff] %vm2802_vm8, %v2889_v49 }
 0x2df   : > { %v2904_v50 = vpop.permute.xlu1 %2903  ;;  %v2902_v51 = vpop.permute.xlu0 %2901 }
 0x2e0   : > { %3084 = vst.msk [vmem:[%s3987_s13 + $0x88] sm:$0xf] %vm2804_vm9, %v2904_v50 }
 0x2e1   : > { %3083 = vst.msk [vmem:[%s3987_s13 + $0x80] sm:$0xff] %vm2802_vm8, %v2902_v51 }
 0x2e3   : > { %v2917_v52 = vpop.permute.xlu1 %2916  ;;  %v2915_v53 = vpop.permute.xlu0 %2914 }
 0x2e4   : > { %3086 = vst.msk [vmem:[%s3987_s13 + $0x98] sm:$0xf] %vm2804_vm9, %v2917_v52 }
 0x2e5   : > { %3085 = vst.msk [vmem:[%s3987_s13 + $0x90] sm:$0xff] %vm2802_vm8, %v2915_v53 }
 0x2e6 PF: > { %s16_s18 = sadd.s32 1, %s3575_s18  }
 0x2e7   : > { %p13_p3 = scmp.ge.s32.totalorder %s16_s18, 4  }
 0x2e9   :  { %15 = sbr.rel (!%p13_p3) target bundleno = 1 (0x1), region = 115 }
 0x2f0   :  { %2944 = vsyncpa [#allocation5], 1 }
 0x2f1   :  { %2946 = vsyncpa [#allocation5 + $0x1], 1 }

</bundles_post_ra>
